<compile_context>
chip_gen: v7x
topology: tpu7x:2x2x1
jax: 0.10.0
libtpu: 0.0.40
codegen_flags: <defaults>
</compile_context>

<pallas_src>
import jax
import jax.numpy as jnp
from jax import lax
from jax.experimental import pallas as pl
from jax.experimental.pallas import tpu as pltpu


HIDDEN = 256
LEAKY_SLOPE = 0.1  # nn.LeakyReLU(0.1) in the source module


def _leaky_relu(x, slope=LEAKY_SLOPE):
    return jnp.where(x > 0, x, slope * x)


def _round_up(n, mult):
    return pl.cdiv(n, mult) * mult


def _discriminator_kernel(x_ref, w1_ref, b1_ref, w2_ref, b2_ref,
                          w3_ref, b3_ref, o_ref):
    # x: (tb, K) f32 -> cast to bf16 only inside the kernel (no extra HBM copy).
    x = x_ref[...].astype(jnp.bfloat16)

    # fc1 + LeakyReLU(0.1): bf16 MXU matmul, f32 accumulation.
    h = jnp.dot(x, w1_ref[...], preferred_element_type=jnp.float32) + b1_ref[...]
    h = _leaky_relu(h)

    # fc2 + LeakyReLU(0.1)
    h = jnp.dot(h.astype(jnp.bfloat16), w2_ref[...],
                preferred_element_type=jnp.float32) + b2_ref[...]
    h = _leaky_relu(h)

    # out (hidden -> 1), computed directly in lane-dense (1, tb) layout:
    # w3 (1, H) contracted with h (tb, H) over H -> (1, tb).  Kept in f32.
    logits = lax.dot_general(
        w3_ref[...], h,
        dimension_numbers=(((1,), (1,)), ((), ())),
        preferred_element_type=jnp.float32) + b3_ref[...]

    o_ref[...] = jax.nn.sigmoid(logits).astype(o_ref.dtype)


def _choose_tile(batch):
    # Small batch: single exact-fit tile (rows rounded up to the 8-sublane
    # boundary), no batch padding, one grid step.  Large batch: 256-row tiles
    # (full M-fill of the 256-wide MXU on v6e/v7x, >=2 tiles for megacore).
    if batch <= 512:
        return _round_up(batch, 8)
    return 256


def prepare_params(params):
    """One-time layout/dtype conversion of f32 (in, out) params for the kernel."""
    return {
        "w1": params["w1"].astype(jnp.bfloat16),                 # (K, H)
        "b1": params["b1"].reshape(1, -1).astype(jnp.float32),   # (1, H)
        "w2": params["w2"].astype(jnp.bfloat16),                 # (H, H)
        "b2": params["b2"].reshape(1, -1).astype(jnp.float32),   # (1, H)
        "w3": params["w3"].reshape(1, -1).astype(jnp.float32),   # (1, H), f32 path
        "b3": params["b3"].reshape(1, 1).astype(jnp.float32),    # (1, 1)
    }


def discriminator_forward(x, kparams):
    """x: (B, img_dim) float32.  kparams: output of prepare_params()."""
    B, K = x.shape
    H = kparams["w1"].shape[1]

    tb = _choose_tile(B)
    Bp = _round_up(B, tb)
    if Bp != B:  # ragged last tile: pad rows only (no lane/dtype padding of x)
        x = jnp.concatenate([x, jnp.zeros((Bp - B, K), x.dtype)], axis=0)
    n_tiles = Bp // tb

    const = lambda shape: pl.BlockSpec(shape, lambda i: (0, 0))  # VMEM-resident

    cost = pl.CostEstimate(
        flops=2 * Bp * (K * H + H * H + H),
        transcendentals=Bp,
        bytes_accessed=(Bp * K * 4                       # x (f32)
                        + (K * H + H * H) * 2            # bf16 weights
                        + (3 * H + 1) * 4                # f32 biases + w3
                        + Bp * 4),                       # output
    )

    out = pl.pallas_call(
        _discriminator_kernel,
        out_shape=jax.ShapeDtypeStruct((1, Bp), jnp.float32),
        grid=(n_tiles,),
        in_specs=[
            pl.BlockSpec((tb, K), lambda i: (i, 0)),   # batch-tiled activations
            const((K, H)), const((1, H)),              # fc1 weight / bias
            const((H, H)), const((1, H)),              # fc2 weight / bias
            const((1, H)), const((1, 1)),              # out weight row / bias
        ],
        out_specs=pl.BlockSpec((1, tb), lambda i: (0, i)),   # lane-dense output
        compiler_params=pltpu.CompilerParams(
            dimension_semantics=("parallel",),   # batch tiles shard across TCs
        ),
        cost_estimate=cost,
    )(x, kparams["w1"], kparams["b1"], kparams["w2"], kparams["b2"],
      kparams["w3"], kparams["b3"])

    return out.reshape(-1)[:B, None]


def init_params(key, img_dim, hidden=HIDDEN):
    """Deterministic init mimicking PyTorch nn.Linear default (U[-1/sqrt(fan_in), +])."""
    def linear(key, fan_in, fan_out):
        kw, kb = jax.random.split(key)
        bound = 1.0 / jnp.sqrt(fan_in)
        # stored as (in, out) == PyTorch weight.T
        w = jax.random.uniform(kw, (fan_in, fan_out), jnp.float32, -bound, bound)
        b = jax.random.uniform(kb, (1, fan_out), jnp.float32, -bound, bound)
        return w, b

    k1, k2, k3 = jax.random.split(key, 3)
    w1, b1 = linear(k1, img_dim, hidden)
    w2, b2 = linear(k2, hidden, hidden)
    w3, b3 = linear(k3, hidden, 1)
    return {"w1": w1, "b1": b1, "w2": w2, "b2": b2, "w3": w3, "b3": b3}


def _reference_forward(x, kp):
    """Pure-JAX reference mirroring the kernel's bf16-matmul / f32-accumulate math."""
    h = jnp.dot(x.astype(jnp.bfloat16), kp["w1"],
                preferred_element_type=jnp.float32) + kp["b1"]
    h = jnp.where(h > 0, h, LEAKY_SLOPE * h)
    h = jnp.dot(h.astype(jnp.bfloat16), kp["w2"],
                preferred_element_type=jnp.float32) + kp["b2"]
    h = jnp.where(h > 0, h, LEAKY_SLOPE * h)
    logits = jnp.dot(h, kp["w3"].T, preferred_element_type=jnp.float32) + kp["b3"]
    return jax.nn.sigmoid(logits)


if __name__ == "__main__":
    key = jax.random.PRNGKey(0)
    k_param, k_x = jax.random.split(key)

    # Flattened 28x28 image (MNIST-style GAN discriminator); B=200 exercises
    # the exact-fit (non-128-multiple) single-tile path.
    batch, img_dim = 200, 784
    params = init_params(k_param, img_dim, hidden=HIDDEN)
    kparams = prepare_params(params)
    x = jax.random.normal(k_x, (batch, img_dim), jnp.float32)

    fwd = jax.jit(discriminator_forward)
    out = jax.block_until_ready(fwd(x, kparams))

    ref = _reference_forward(x, kparams)
    assert out.shape == (batch, 1)
    err = float(jnp.max(jnp.abs(out - ref)))
    assert err < 2e-3, "max abs err = %g" % err

    print("KERNEL_OK")
</pallas_src>

<mosaic_0001>
module attributes {stable_mosaic.version = 11 : i64} {
  func.func @_discriminator_kernel(%arg0: i32, %arg1: memref<200x784xf32, #tpu.memory_space<vmem>>, %arg2: memref<784x256xbf16, #tpu.memory_space<vmem>>, %arg3: memref<1x256xf32, #tpu.memory_space<vmem>>, %arg4: memref<256x256xbf16, #tpu.memory_space<vmem>>, %arg5: memref<1x256xf32, #tpu.memory_space<vmem>>, %arg6: memref<1x256xf32, #tpu.memory_space<vmem>>, %arg7: memref<1x1xf32, #tpu.memory_space<vmem>>, %arg8: memref<1x200xf32, #tpu.memory_space<vmem>>) attributes {dimension_semantics = [#tpu.dimension_semantics<parallel>], iteration_bounds = array<i64: 1>, scalar_prefetch = 0 : i64, scratch_operands = 0 : i64, tpu.core_type = #tpu.core_type<tc>, window_params = [{transform_indices = @transform_0, window_bounds = array<i64: 200, 784>}, {pipeline_mode = #tpu.pipeline_mode<synchronous>, transform_indices = @transform_1, window_bounds = array<i64: 784, 256>}, {pipeline_mode = #tpu.pipeline_mode<synchronous>, transform_indices = @transform_2, window_bounds = array<i64: 1, 256>}, {pipeline_mode = #tpu.pipeline_mode<synchronous>, transform_indices = @transform_3, window_bounds = array<i64: 256, 256>}, {pipeline_mode = #tpu.pipeline_mode<synchronous>, transform_indices = @transform_4, window_bounds = array<i64: 1, 256>}, {pipeline_mode = #tpu.pipeline_mode<synchronous>, transform_indices = @transform_5, window_bounds = array<i64: 1, 256>}, {pipeline_mode = #tpu.pipeline_mode<synchronous>, transform_indices = @transform_6, window_bounds = array<i64: 1, 1>}, {transform_indices = @transform_7, window_bounds = array<i64: 1, 200>}]} {
    %c0 = arith.constant 0 : index
    %c0_0 = arith.constant 0 : index
    %0 = vector.load %arg1[%c0, %c0_0] : memref<200x784xf32, #tpu.memory_space<vmem>>, vector<200x784xf32>
    %1 = arith.truncf %0 : vector<200x784xf32> to vector<200x784xbf16>
    %c0_1 = arith.constant 0 : index
    %c0_2 = arith.constant 0 : index
    %2 = vector.load %arg2[%c0_1, %c0_2] : memref<784x256xbf16, #tpu.memory_space<vmem>>, vector<784x256xbf16>
    %cst = arith.constant dense<0.000000e+00> : vector<200x256xf32>
    %3 = tpu.matmul %1, %2, %cst {dimension_numbers = #tpu.dot_dimension_numbers<[1], [0], [0], [1], [0, 0, 1, 1], [], []>} : vector<200x784xbf16>, vector<784x256xbf16>, vector<200x256xf32> -> vector<200x256xf32>
    %c0_3 = arith.constant 0 : index
    %c0_4 = arith.constant 0 : index
    %4 = vector.load %arg3[%c0_3, %c0_4] : memref<1x256xf32, #tpu.memory_space<vmem>>, vector<1x256xf32>
    %5 = vector.broadcast %4 : vector<1x256xf32> to vector<200x256xf32>
    %6 = arith.addf %3, %5 : vector<200x256xf32>
    %cst_5 = arith.constant 0.000000e+00 : f32
    %7 = vector.broadcast %cst_5 : f32 to vector<200x256xf32>
    %8 = arith.cmpf ogt, %6, %7 : vector<200x256xf32>
    %cst_6 = arith.constant 1.000000e-01 : f32
    %9 = vector.broadcast %cst_6 : f32 to vector<200x256xf32>
    %10 = arith.mulf %9, %6 : vector<200x256xf32>
    %11 = arith.select %8, %6, %10 : vector<200x256xi1>, vector<200x256xf32>
    %12 = arith.truncf %11 : vector<200x256xf32> to vector<200x256xbf16>
    %c0_7 = arith.constant 0 : index
    %c0_8 = arith.constant 0 : index
    %13 = vector.load %arg4[%c0_7, %c0_8] : memref<256x256xbf16, #tpu.memory_space<vmem>>, vector<256x256xbf16>
    %cst_9 = arith.constant dense<0.000000e+00> : vector<200x256xf32>
    %14 = tpu.matmul %12, %13, %cst_9 {dimension_numbers = #tpu.dot_dimension_numbers<[1], [0], [0], [1], [0, 0, 1, 1], [], []>} : vector<200x256xbf16>, vector<256x256xbf16>, vector<200x256xf32> -> vector<200x256xf32>
    %c0_10 = arith.constant 0 : index
    %c0_11 = arith.constant 0 : index
    %15 = vector.load %arg5[%c0_10, %c0_11] : memref<1x256xf32, #tpu.memory_space<vmem>>, vector<1x256xf32>
    %16 = vector.broadcast %15 : vector<1x256xf32> to vector<200x256xf32>
    %17 = arith.addf %14, %16 : vector<200x256xf32>
    %cst_12 = arith.constant 0.000000e+00 : f32
    %18 = vector.broadcast %cst_12 : f32 to vector<200x256xf32>
    %19 = arith.cmpf ogt, %17, %18 : vector<200x256xf32>
    %cst_13 = arith.constant 1.000000e-01 : f32
    %20 = vector.broadcast %cst_13 : f32 to vector<200x256xf32>
    %21 = arith.mulf %20, %17 : vector<200x256xf32>
    %22 = arith.select %19, %17, %21 : vector<200x256xi1>, vector<200x256xf32>
    %c0_14 = arith.constant 0 : index
    %c0_15 = arith.constant 0 : index
    %23 = vector.load %arg6[%c0_14, %c0_15] : memref<1x256xf32, #tpu.memory_space<vmem>>, vector<1x256xf32>
    %cst_16 = arith.constant dense<0.000000e+00> : vector<1x200xf32>
    %24 = tpu.matmul %23, %22, %cst_16 {dimension_numbers = #tpu.dot_dimension_numbers<[1], [1], [0], [0], [0, 0, 1, 0], [], []>} : vector<1x256xf32>, vector<200x256xf32>, vector<1x200xf32> -> vector<1x200xf32>
    %c0_17 = arith.constant 0 : index
    %c0_18 = arith.constant 0 : index
    %25 = vector.load %arg7[%c0_17, %c0_18] : memref<1x1xf32, #tpu.memory_space<vmem>>, vector<1x1xf32>
    %26 = vector.broadcast %25 : vector<1x1xf32> to vector<1x200xf32>
    %27 = arith.addf %24, %26 : vector<1x200xf32>
    %28 = arith.negf %27 : vector<1x200xf32>
    %29 = math.exp %28 : vector<1x200xf32>
    %cst_19 = arith.constant 1.000000e+00 : f32
    %30 = vector.broadcast %cst_19 : f32 to vector<1x200xf32>
    %31 = arith.addf %30, %29 : vector<1x200xf32>
    %32 = arith.divf %30, %31 : vector<1x200xf32>
    %c0_20 = arith.constant 0 : index
    %c0_21 = arith.constant 0 : index
    %33 = vector.load %arg8[%c0_20, %c0_21] : memref<1x200xf32, #tpu.memory_space<vmem>>, vector<1x200xf32>
    tpu.vector_store %arg8[%c0_20, %c0_21], %32 {strides = array<i32>} : memref<1x200xf32, #tpu.memory_space<vmem>>, vector<1x200xf32>,
    return
  }
  func.func @transform_0(%arg0: i32) -> (i32, i32) {
    %c0_i32 = arith.constant 0 : i32
    %c0_i32_0 = arith.constant 0 : i32
    return %arg0, %c0_i32 : i32, i32
  }
  func.func @transform_1(%arg0: i32) -> (i32, i32) {
    %c0_i32 = arith.constant 0 : i32
    %c0_i32_0 = arith.constant 0 : i32
    %c0_i32_1 = arith.constant 0 : i32
    return %c0_i32, %c0_i32_0 : i32, i32
  }
  func.func @transform_2(%arg0: i32) -> (i32, i32) {
    %c0_i32 = arith.constant 0 : i32
    %c0_i32_0 = arith.constant 0 : i32
    %c0_i32_1 = arith.constant 0 : i32
    return %c0_i32, %c0_i32_0 : i32, i32
  }
  func.func @transform_3(%arg0: i32) -> (i32, i32) {
    %c0_i32 = arith.constant 0 : i32
    %c0_i32_0 = arith.constant 0 : i32
    %c0_i32_1 = arith.constant 0 : i32
    return %c0_i32, %c0_i32_0 : i32, i32
  }
  func.func @transform_4(%arg0: i32) -> (i32, i32) {
    %c0_i32 = arith.constant 0 : i32
    %c0_i32_0 = arith.constant 0 : i32
    %c0_i32_1 = arith.constant 0 : i32
    return %c0_i32, %c0_i32_0 : i32, i32
  }
  func.func @transform_5(%arg0: i32) -> (i32, i32) {
    %c0_i32 = arith.constant 0 : i32
    %c0_i32_0 = arith.constant 0 : i32
    %c0_i32_1 = arith.constant 0 : i32
    return %c0_i32, %c0_i32_0 : i32, i32
  }
  func.func @transform_6(%arg0: i32) -> (i32, i32) {
    %c0_i32 = arith.constant 0 : i32
    %c0_i32_0 = arith.constant 0 : i32
    %c0_i32_1 = arith.constant 0 : i32
    return %c0_i32, %c0_i32_0 : i32, i32
  }
  func.func @transform_7(%arg0: i32) -> (i32, i32) {
    %c0_i32 = arith.constant 0 : i32
    %c0_i32_0 = arith.constant 0 : i32
    return %c0_i32, %arg0 : i32, i32
  }
}

</mosaic_0001>

<bundles_post_ra>
// kernel: discriminator_forward.1
= control target key start
LH: loop header
LB: loop body
LE: loop exit
PB: predicated region body
PF: predicated region fallthrough
CT: control target
= control target key end

     0   :  { %s3744_s0 = inlined_call_operand.hbm [shape: f32[200,784], index: 0, kind: input, shape index: {}]   ;;  %s3745_s1 = inlined_call_operand.hbm [shape: bf16[784,256], index: 1, kind: input, shape index: {}]   ;;  %s3746_s2 = inlined_call_operand.vmem [shape: f32[1,256], index: 2, kind: input, shape index: {}]   ;;  %s3747_s3 = inlined_call_operand.hbm [shape: bf16[256,256], index: 3, kind: input, shape index: {}]   ;;  %s3748_s4 = inlined_call_operand.vmem [shape: f32[1,256], index: 4, kind: input, shape index: {}]   ;;  %s3749_s5 = inlined_call_operand.vmem [shape: f32[1,256], index: 5, kind: input, shape index: {}]   ;;  %s3750_s6 = inlined_call_operand.<no memory space> [shape: f32[1,1], index: 6, kind: input, shape index: {}]   ;;  %s3751_s7 = inlined_call_operand.hbm [shape: f32[1,200], index: 7, kind: output, shape index: {}]  }
   0x1   :  { %v12_v0 = vstv %s3750_s6 }
   0x2   :  { %13 = vst [vmem:[#allocation2] sm:$0x1] %v12_v0 }
   0x3   :  { %14 = vsyncpa [#allocation4], 0 }
   0x4   :  { %15 = vsyncpa [#allocation7], 0 }
   0x5   :  { %16 = vsyncpa [#allocation5], 0  ;;  %s3193_s26 = smov [#allocation6]   ;;  %s3099_s30 = scalar_lea.hbm %s3745_s1, 12544 }
   0x6   :  { %s34_s27 = sshll.u32 %s3193_s26, 4  ;;  %p3100_p0 = scmp.ne.s32.totalorder %s3745_s1, %s3099_s30  ;;  %s35_s27 = int_to_ptr.vmem [resolvable:$true] %s34_s27 }
   0x7   :  { %p3103_p1 = scmp.lt.u32.totalorder %s3099_s30, %s3745_s1 }
   0x9   :  { %p3105_p2 = pnand %p3103_p1, %p3100_p0 }
   0xb   :  { %3108 = shalt.err (!%p3105_p2)
}
   0xc   :  { %s3109_s6 = scalar_lea.vmem %s35_s27, 12544  ;;  %p3114_p4 = scmp.lt.s32.totalorder %s35_s27, %s35_s27 }
   0xd   :  { %p3110_p3 = scmp.ne.s32.totalorder %s35_s27, %s3109_s6  ;;  %p3115_p5 = scmp.lt.s32.totalorder %s3109_s6, %s3109_s6 }
   0xf   :  { %p3116_p6 = por %p3115_p5, %p3114_p4 }
  0x11   :  { %p3117_p7 = pnand %p3116_p6, %p3110_p3 }
  0x13   :  { %3120 = shalt.err (!%p3117_p7)
}
  0x14   :  { %s3194_s12 = smov 128   ;;  %s3195_s13 = smov 8  }
  0x15   :  { %40 = dma.hbm_to_vmem [thread:$0]  %s3745_s1, 12544, %s35_s27, [#allocation7], %s3194_s12, %s3194_s12, %s3195_s13  }
  0x16   :  { %s3196_s16 = smov [#allocation3]   ;;  %s3121_s20 = scalar_lea.hbm %s3744_s0, 22400 }
  0x17   :  { %s22_s17 = sshll.u32 %s3196_s16, 4  ;;  %p3122_p8 = scmp.ne.s32.totalorder %s3744_s0, %s3121_s20  ;;  %s23_s17 = int_to_ptr.vmem [resolvable:$true] %s22_s17 }
  0x18   :  { %p3125_p9 = scmp.lt.u32.totalorder %s3121_s20, %s3744_s0 }
  0x1a   :  { %p3127_p10 = pnand %p3125_p9, %p3122_p8 }
  0x1c   :  { %3130 = shalt.err (!%p3127_p10)
}
  0x1d   :  { %s3131_s25 = scalar_lea.vmem %s23_s17, 22400  ;;  %p3136_p12 = scmp.lt.s32.totalorder %s23_s17, %s23_s17 }
  0x1e   :  { %p3132_p11 = scmp.ne.s32.totalorder %s23_s17, %s3131_s25  ;;  %p3137_p13 = scmp.lt.s32.totalorder %s3131_s25, %s3131_s25 }
  0x20   :  { %p3138_p0 = por %p3137_p13, %p3136_p12 }
  0x22   :  { %p3139_p1 = pnand %p3138_p0, %p3132_p11 }
  0x24   :  { %3142 = shalt.err (!%p3139_p1)
}
  0x25   :  { %s3197_s1 = smov 896   ;;  %s3198_s26 = smov 56  }
  0x26   :  { %28 = dma.hbm_to_vmem [thread:$0]  %s3744_s0, 22400, %s23_s17, [#allocation4], %s3197_s1, %s3197_s1, %s3198_s26  }
  0x27   :  { %s3199_s29 = smov [#allocation8]   ;;  %s3143_s10 = scalar_lea.hbm %s3747_s3, 4096 }
  0x28   :  { %s48_s30 = sshll.u32 %s3199_s29, 4  ;;  %p3144_p2 = scmp.ne.s32.totalorder %s3747_s3, %s3143_s10  ;;  %s49_s30 = int_to_ptr.vmem [resolvable:$true] %s48_s30 }
  0x29   :  { %p3147_p3 = scmp.lt.u32.totalorder %s3143_s10, %s3747_s3 }
  0x2b   :  { %p3149_p4 = pnand %p3147_p3, %p3144_p2 }
  0x2d   :  { %3152 = shalt.err (!%p3149_p4)
}
  0x2e   :  { %s3153_s16 = scalar_lea.vmem %s49_s30, 4096  ;;  %p3158_p6 = scmp.lt.s32.totalorder %s49_s30, %s49_s30 }
  0x2f   :  { %p3154_p5 = scmp.ne.s32.totalorder %s49_s30, %s3153_s16  ;;  %p3159_p7 = scmp.lt.s32.totalorder %s3153_s16, %s3153_s16 }
  0x31   :  { %p3160_p8 = por %p3159_p7, %p3158_p6 }
  0x33   :  { %p3161_p9 = pnand %p3160_p8, %p3154_p5 }
  0x35   :  { %3164 = shalt.err (!%p3161_p9)
}
  0x36   :  { %54 = dma.hbm_to_vmem [thread:$0]  %s3747_s3, 4096, %s49_s30, [#allocation7], %s3194_s12, %s3194_s12, %s3195_s13  }
  0x37   :  { %3187 = dma.done.wait [#allocation4], 22400  }
  0x38   :  { %3188 = vsyncadd [#allocation4], 4294944896 }
  0x39   :  { %3189 = dma.done.wait [#allocation7], 16640  }
  0x3a   :  { %3190 = vsyncadd [#allocation7], 4294950656  ;;  %v3288_v1 = vld [vmem:[#allocation6 + $0x104] ss:$8 sps:$4 sm:$0xff]   ;;  %v3290_v2 = vld [vmem:[#allocation6 + $0x100] ss:$8 sps:$4 sm:$0xff]  }
  0x3b   :  { %1138 = vmatprep.subr.bf16.mxu0 %v3288_v1  ;;  %v3293_v3 = vld [vmem:[#allocation6 + $0x114] ss:$8 sps:$4 sm:$0xff]   ;;  %v3296_v4 = vld [vmem:[#allocation6 + $0x110] ss:$8 sps:$4 sm:$0xff]   ;;  %v3299_v5 = vld [vmem:[#allocation6 + $0x124] ss:$8 sps:$4 sm:$0xff]  }
  0x3c   :  { %1139 = vmatpush1.bf16.msra.mxu0 %v3290_v2  ;;  %v3302_v6 = vld [vmem:[#allocation6 + $0x120] ss:$8 sps:$4 sm:$0xff]   ;;  %v3305_v7 = vld [vmem:[#allocation6 + $0x134] ss:$8 sps:$4 sm:$0xff]   ;;  %v3308_v8 = vld [vmem:[#allocation6 + $0x130] ss:$8 sps:$4 sm:$0xff]  }
  0x3d   :  { %1140 = vmatprep.subr.bf16.mxu0 %v3293_v3  ;;  %v3311_v9 = vld [vmem:[#allocation6 + $0x144] ss:$8 sps:$4 sm:$0xff]   ;;  %v3314_v10 = vld [vmem:[#allocation6 + $0x140] ss:$8 sps:$4 sm:$0xff]   ;;  %v3317_v11 = vld [vmem:[#allocation6 + $0x154] ss:$8 sps:$4 sm:$0xff]  }
  0x3e   :  { %v3320_v12 = vld [vmem:[#allocation6 + $0x150] ss:$8 sps:$4 sm:$0xff]   ;;  %v3323_v13 = vld [vmem:[#allocation6 + $0x164] ss:$8 sps:$4 sm:$0xff]   ;;  %v3326_v17 = vld [vmem:[#allocation6 + $0x160] ss:$8 sps:$4 sm:$0xff]  }
  0x3f   :  { %v74_v14 = vld [vmem:[#allocation3 + $0x18] sm:$0xff]  ;;  %v81_v15 = vld [vmem:[#allocation3 + $0x50] sm:$0xff]  ;;  %v80_v52 = vld [vmem:[#allocation3 + $0x48] sm:$0xff]  ;;  %vm937_vm0 = vcmask 130048  }
  0x40   :  { %1141 = vmatpush1.bf16.msra.mxu0 %v3296_v4  ;;  %v249_v16 = vpack.c.bf16 %v81_v15, %v74_v14  ;;  %v3329_v18 = vld [vmem:[#allocation6 + $0x174] ss:$8 sps:$4 sm:$0xff]   ;;  %v3332_v19 = vld [vmem:[#allocation6 + $0x170] ss:$8 sps:$4 sm:$0xff]   ;;  %v3335_v20 = vld [vmem:[#allocation6 + $0x184] ss:$8 sps:$4 sm:$0xff]  }
  0x41   :  { %1142 = vmatprep.subr.bf16.mxu0 %v3299_v5  ;;  %v3338_v21 = vld [vmem:[#allocation6 + $0x180] ss:$8 sps:$4 sm:$0xff]   ;;  %v3340_v22 = vld [vmem:[#allocation6 + $0x194] ss:$8 sps:$4 sm:$0xff]   ;;  %v2959_v23 = vld [vmem:[#allocation6 + $0x4] ss:$8 sps:$4 sm:$0xff]  }
  0x42   :  { %1170 = vmatprep.mubr.bf16.mxu0 %v249_v16  ;;  %v2961_v24 = vld [vmem:[#allocation6] ss:$8 sps:$4 sm:$0xff]   ;;  %977 = vmatprep.subr.bf16.mxu1 %v2959_v23  ;;  %v3344_v25 = vld [vmem:[#allocation6 + $0x190] ss:$8 sps:$4 sm:$0xff]   ;;  %v2965_v26 = vld [vmem:[#allocation6 + $0x14] ss:$8 sps:$4 sm:$0xff]  }
  0x43   :  { %978 = vmatpush1.bf16.msra.mxu1 %v2961_v24  ;;  %v3347_v27 = vld [vmem:[#allocation6 + $0x1a4] ss:$8 sps:$4 sm:$0xff]   ;;  %v2967_v28 = vld [vmem:[#allocation6 + $0x10] ss:$8 sps:$4 sm:$0xff]   ;;  %v3349_v29 = vld [vmem:[#allocation6 + $0x1a0] ss:$8 sps:$4 sm:$0xff]  }
  0x44   :  { %1143 = vmatpush1.bf16.msra.mxu0 %v3302_v6  ;;  %979 = vmatprep.subr.bf16.mxu1 %v2965_v26  ;;  %v2971_v30 = vld [vmem:[#allocation6 + $0x24] ss:$8 sps:$4 sm:$0xff]   ;;  %v2973_v31 = vld [vmem:[#allocation6 + $0x20] ss:$8 sps:$4 sm:$0xff]   ;;  %v3353_v32 = vld [vmem:[#allocation6 + $0x1b4] ss:$8 sps:$4 sm:$0xff]  }
  0x45   :  { %1144 = vmatprep.subr.bf16.mxu0 %v3305_v7  ;;  %v2977_v33 = vld [vmem:[#allocation6 + $0x34] ss:$8 sps:$4 sm:$0xff]   ;;  %v3356_v34 = vld [vmem:[#allocation6 + $0x1b0] ss:$8 sps:$4 sm:$0xff]   ;;  %v3359_v36 = vld [vmem:[#allocation6 + $0x1c4] ss:$8 sps:$4 sm:$0xff]  }
  0x46   :  { %v2979_v35 = vld [vmem:[#allocation6 + $0x30] ss:$8 sps:$4 sm:$0xff]   ;;  %v3361_v37 = vld [vmem:[#allocation6 + $0x1c0] ss:$8 sps:$4 sm:$0xff]   ;;  %v2983_v38 = vld [vmem:[#allocation6 + $0x44] ss:$8 sps:$4 sm:$0xff]  }
  0x47   :  { %980 = vmatpush1.bf16.msra.mxu1 %v2967_v28  ;;  %v3364_v39 = vld [vmem:[#allocation6 + $0x1d4] ss:$8 sps:$4 sm:$0xff]   ;;  %v2985_v40 = vld [vmem:[#allocation6 + $0x40] ss:$8 sps:$4 sm:$0xff]   ;;  %v3367_v42 = vld [vmem:[#allocation6 + $0x1d0] ss:$8 sps:$4 sm:$0xff]  }
  0x48   :  { %1145 = vmatpush1.bf16.msra.mxu0 %v3308_v8  ;;  %981 = vmatprep.subr.bf16.mxu1 %v2971_v30  ;;  %v2989_v41 = vld [vmem:[#allocation6 + $0x54] ss:$8 sps:$4 sm:$0xff]   ;;  %v3370_v43 = vld [vmem:[#allocation6 + $0x1e4] ss:$8 sps:$4 sm:$0xff]   ;;  %v2991_v44 = vld [vmem:[#allocation6 + $0x50] ss:$8 sps:$4 sm:$0xff]  }
  0x49   :  { %1146 = vmatprep.subr.bf16.mxu0 %v3311_v9  ;;  %v2995_v45 = vld [vmem:[#allocation6 + $0x64] ss:$8 sps:$4 sm:$0xff]   ;;  %v3374_v46 = vld [vmem:[#allocation6 + $0x1e0] ss:$8 sps:$4 sm:$0xff]   ;;  %v3377_v48 = vld [vmem:[#allocation6 + $0x1f4] ss:$8 sps:$4 sm:$0xff]  }
  0x4a   :  { %v2997_v47 = vld [vmem:[#allocation6 + $0x60] ss:$8 sps:$4 sm:$0xff]   ;;  %v3001_v49 = vld [vmem:[#allocation6 + $0x74] ss:$8 sps:$4 sm:$0xff]   ;;  %v3379_v50 = vld [vmem:[#allocation6 + $0x1f0] ss:$8 sps:$4 sm:$0xff]  }
  0x4b   :  { %982 = vmatpush1.bf16.msra.mxu1 %v2973_v31  ;;  %v73_v51 = vld [vmem:[#allocation3 + $0x10] sm:$0xff]  ;;  %v2946_v53 = vld [vmem:[#allocation6 + $0x204] ss:$8 sps:$4 sm:$0xff]   ;;  %v88_v54 = vld [vmem:[#allocation3 + $0x88] sm:$0xff] }
  0x4c   :  { %1147 = vmatpush1.bf16.msra.mxu0 %v3314_v10  ;;  %983 = vmatprep.subr.bf16.mxu1 %v2977_v33  ;;  %v95_v55 = vld [vmem:[#allocation3 + $0xc0] sm:$0xff]  ;;  %v3003_v56 = vld [vmem:[#allocation6 + $0x70] ss:$8 sps:$4 sm:$0xff]   ;;  %v248_v58 = vpack.c.bf16 %v80_v52, %v73_v51  ;;  %v2949_v60 = vld [vmem:[#allocation6 + $0x214] ss:$8 sps:$4 sm:$0xff]  }
  0x4d   :  { %1148 = vmatprep.subr.bf16.mxu0 %v3317_v11  ;;  %v3007_v57 = vld [vmem:[#allocation6 + $0x84] ss:$8 sps:$4 sm:$0xff]   ;;  %v2944_v59 = vld [vmem:[#allocation6 + $0x200] ss:$8 sps:$4 sm:$0xff]   ;;  %v256_v61 = vpack.c.bf16 %v95_v55, %v88_v54  ;;  %v2947_v63 = vld [vmem:[#allocation6 + $0x210] ss:$8 sps:$4 sm:$0xff]  }
  0x4e   :  { %v3009_v62 = vld [vmem:[#allocation6 + $0x80] ss:$8 sps:$4 sm:$0xff]   ;;  %v3013_v14 = vld [vmem:[#allocation6 + $0x94] ss:$8 sps:$4 sm:$0xff]   ;;  %v2952_v16 = vld [vmem:[#allocation6 + $0x224] ss:$8 sps:$4 sm:$0xff]  }
  0x4f   :  { %984 = vmatpush1.bf16.msra.mxu1 %v2979_v35  ;;  %v87_v0 = vld [vmem:[#allocation3 + $0x80] sm:$0xff]  ;;  %v94_v15 = vld [vmem:[#allocation3 + $0xb8] sm:$0xff]  ;;  %v109_v24 = vld [vmem:[#allocation3 + $0x130] sm:$0xff] }
  0x50   :  { %1149 = vmatpush1.bf16.msra.mxu0 %v3320_v12  ;;  %985 = vmatprep.subr.bf16.mxu1 %v2983_v38  ;;  %v102_v23 = vld [vmem:[#allocation3 + $0xf8] sm:$0xff]  ;;  %v3015_v26 = vld [vmem:[#allocation6 + $0x90] ss:$8 sps:$4 sm:$0xff]   ;;  %v255_v30 = vpack.c.bf16 %v94_v15, %v87_v0  ;;  %v2955_v33 = vld [vmem:[#allocation6 + $0x234] ss:$8 sps:$4 sm:$0xff]  }
  0x51   :  { %1150 = vmatprep.subr.bf16.mxu0 %v3323_v13  ;;  %v3019_v28 = vld [vmem:[#allocation6 + $0xa4] ss:$8 sps:$4 sm:$0xff]   ;;  %v2950_v31 = vld [vmem:[#allocation6 + $0x220] ss:$8 sps:$4 sm:$0xff]   ;;  %v263_v35 = vpack.c.bf16 %v109_v24, %v102_v23  ;;  %v3027_v52 = vld [vmem:[#allocation6 + $0xb0] ss:$8 sps:$4 sm:$0xff]  }
  0x52   :  { %v3021_v38 = vld [vmem:[#allocation6 + $0xa0] ss:$8 sps:$4 sm:$0xff]   ;;  %v2970_v15 = vld [vmem:[#allocation6 + $0x264] ss:$8 sps:$4 sm:$0xff]   ;;  %v137_v23 = vld [vmem:[#allocation3 + $0x210] sm:$0xff] }
  0x53   :  { %986 = vmatpush1.bf16.msra.mxu1 %v2985_v40  ;;  %v3025_v40 = vld [vmem:[#allocation6 + $0xb4] ss:$8 sps:$4 sm:$0xff]   ;;  %v123_v51 = vld [vmem:[#allocation3 + $0x1a0] sm:$0xff]  ;;  %v3036_v24 = vld [vmem:[#allocation6 + $0xd0] ss:$8 sps:$4 sm:$0xff]  }
  0x54   :  { %1151 = vmatpush1.bf16.msra.mxu0 %v3326_v17  ;;  %987 = vmatprep.subr.bf16.mxu1 %v2989_v41  ;;  %v2953_v41 = vld [vmem:[#allocation6 + $0x230] ss:$8 sps:$4 sm:$0xff]   ;;  %v2956_v55 = vld [vmem:[#allocation6 + $0x240] ss:$8 sps:$4 sm:$0xff]  }
  0x55   :  { %1152 = vmatprep.subr.bf16.mxu0 %v3329_v18  ;;  %v115_v0 = vld [vmem:[#allocation3 + $0x160] sm:$0xff] }
  0x57   :  { %988 = vmatpush1.bf16.msra.mxu1 %v2991_v44  ;;  %v101_v44 = vld [vmem:[#allocation3 + $0xf0] sm:$0xff] }
  0x58   :  { %1153 = vmatpush1.bf16.msra.mxu0 %v3332_v19  ;;  %989 = vmatprep.subr.bf16.mxu1 %v2995_v45  ;;  %v108_v45 = vld [vmem:[#allocation3 + $0x128] sm:$0xff] }
  0x59   :  { %1154 = vmatprep.subr.bf16.mxu0 %v3335_v20  ;;  %v262_v54 = vpack.c.bf16 %v108_v45, %v101_v44  ;;  %v136_v44 = vld [vmem:[#allocation3 + $0x208] sm:$0xff]  ;;  %v2982_v45 = vld [vmem:[#allocation6 + $0x284] ss:$8 sps:$4 sm:$0xff]  }
  0x5b   :  { %990 = vmatpush1.bf16.msra.mxu1 %v2997_v47  ;;  %v2958_v47 = vld [vmem:[#allocation6 + $0x244] ss:$8 sps:$4 sm:$0xff]  }
  0x5c   :  { %1155 = vmatpush1.bf16.msra.mxu0 %v3338_v21  ;;  %991 = vmatprep.subr.bf16.mxu1 %v3001_v49  ;;  %v116_v49 = vld [vmem:[#allocation3 + $0x168] sm:$0xff] }
  0x5d   :  { %1156 = vmatprep.subr.bf16.mxu0 %v3340_v22 }
  0x5f   :  { %992 = vmatpush1.bf16.msra.mxu1 %v3003_v56  ;;  %v2964_v56 = vld [vmem:[#allocation6 + $0x254] ss:$8 sps:$4 sm:$0xff]  }
  0x60   :  { %1157 = vmatpush1.bf16.msra.mxu0 %v3344_v25  ;;  %993 = vmatprep.subr.bf16.mxu1 %v3007_v57  ;;  %v270_v57 = vpack.c.bf16 %v123_v51, %v116_v49  ;;  %v151_v49 = vld [vmem:[#allocation3 + $0x280] sm:$0xff]  ;;  %v3042_v51 = vld [vmem:[#allocation6 + $0xf0] ss:$8 sps:$4 sm:$0xff]  }
  0x61   :  { %1158 = vmatprep.subr.bf16.mxu0 %v3347_v27 }
  0x63   :  { %994 = vmatpush1.bf16.msra.mxu1 %v3009_v62 }
  0x64   :  { %1159 = vmatpush1.bf16.msra.mxu0 %v3349_v29  ;;  %995 = vmatprep.subr.bf16.mxu1 %v3013_v14  ;;  %v122_v14 = vld [vmem:[#allocation3 + $0x198] sm:$0xff] }
  0x65   :  { %1160 = vmatprep.subr.bf16.mxu0 %v3353_v32 }
  0x67   :  { %996 = vmatpush1.bf16.msra.mxu1 %v3015_v26  ;;  %v3037_v26 = vld [vmem:[#allocation6 + $0xe4] ss:$8 sps:$4 sm:$0xff]  }
  0x68   :  { %1161 = vmatpush1.bf16.msra.mxu0 %v3356_v34  ;;  %997 = vmatprep.subr.bf16.mxu1 %v3019_v28  ;;  %v269_v28 = vpack.c.bf16 %v122_v14, %v115_v0  ;;  %v150_v0 = vld [vmem:[#allocation3 + $0x278] sm:$0xff] }
  0x69   :  { %1162 = vmatprep.subr.bf16.mxu0 %v3359_v36  ;;  %v2994_v14 = vld [vmem:[#allocation6 + $0x2a4] ss:$8 sps:$4 sm:$0xff]  }
  0x6b   :  { %998 = vmatpush1.bf16.msra.mxu1 %v3021_v38  ;;  %v3040_v38 = vld [vmem:[#allocation6 + $0xf4] ss:$8 sps:$4 sm:$0xff]  }
  0x6c   :  { %1163 = vmatpush1.bf16.msra.mxu0 %v3361_v37  ;;  %999 = vmatprep.subr.bf16.mxu1 %v3025_v40  ;;  %v2974_v40 = vld [vmem:[#allocation6 + $0x270] ss:$8 sps:$4 sm:$0xff]  }
  0x6d   :  { %1164 = vmatprep.subr.bf16.mxu0 %v3364_v39 }
  0x6f   :  { %1000 = vmatpush1.bf16.msra.mxu1 %v3027_v52  ;;  %v71_v52 = vld [vmem:[#allocation3] sm:$0xff] }
  0x70   :  { %1165 = vmatpush1.bf16.msra.mxu0 %v3367_v42 }
  0x71   :  { %1166 = vmatprep.subr.bf16.mxu0 %v3370_v43 }
  0x74   :  { %1167 = vmatpush1.bf16.msra.mxu0 %v3374_v46 }
  0x75   :  { %1168 = vmatprep.subr.bf16.mxu0 %v3377_v48 }
  0x78   :  { %1169 = vmatpush1.bf16.msra.mxu0 %v3379_v50 }
  0x79   :  { %1299 = vmatprep.subr.bf16.mxu0 %v2946_v53  ;;  %v3028_v53 = vld [vmem:[#allocation6 + $0xc4] ss:$8 sps:$4 sm:$0xff]  }
  0x7a   :  { %1001 = vmatprep.subr.bf16.mxu1 %v3028_v53  ;;  %v78_v53 = vld [vmem:[#allocation3 + $0x38] sm:$0xff] }
  0x7b   :  { %1171 = vmatmul.mubr.bf16.vlgmr.msra.gmra.mrb[0].mxu0 %v248_v58  ;;  %v3030_v58 = vld [vmem:[#allocation6 + $0xc0] ss:$8 sps:$4 sm:$0xff]  }
  0x7c   :  { %1300 = vmatpush1.bf16.msra.mxu0 %v2944_v59  ;;  %1180 = vmatprep.mubr.bf16.mxu0 %v256_v61  ;;  %v72_v59 = vld [vmem:[#allocation3 + $0x8] sm:$0xff] }
  0x7d   :  { %1301 = vmatprep.subr.bf16.mxu0 %v2949_v60  ;;  %v79_v60 = vld [vmem:[#allocation3 + $0x40] sm:$0xff]  ;;  %v3034_v61 = vld [vmem:[#allocation6 + $0xd4] ss:$8 sps:$4 sm:$0xff]   ;;  %1002 = vmatpush1.bf16.msra.mxu1 %v3030_v58 }
  0x7e   :  { %v247_v62 = vpack.c.bf16 %v79_v60, %v72_v59  ;;  %1003 = vmatprep.subr.bf16.mxu1 %v3034_v61  ;;  %v2988_v59 = vld [vmem:[#allocation6 + $0x294] ss:$8 sps:$4 sm:$0xff]   ;;  %v246_v60 = vpack.c.bf16 %v78_v53, %v71_v52  ;;  %v106_v52 = vld [vmem:[#allocation3 + $0x118] sm:$0xff] }
  0x7f   :  { %v114_v53 = vld [vmem:[#allocation3 + $0x158] sm:$0xff] }
  0x80   :  { %1302 = vmatpush1.bf16.msra.mxu0 %v2947_v63  ;;  %v2962_v63 = vld [vmem:[#allocation6 + $0x250] ss:$8 sps:$4 sm:$0xff]   ;;  %1009 = vmatprep.mubr.bf16.mxu1 %v247_v62 }
  0x81   :  { %1303 = vmatprep.subr.bf16.mxu0 %v2952_v16  ;;  %v130_v16 = vld [vmem:[#allocation3 + $0x1d8] sm:$0xff]  ;;  %1004 = vmatpush1.bf16.msra.mxu1 %v3036_v24  ;;  %v2986_v62 = vld [vmem:[#allocation6 + $0x290] ss:$8 sps:$4 sm:$0xff]  }
  0x82   :  { %1005 = vmatprep.subr.bf16.mxu1 %v3037_v26  ;;  %v92_v24 = vld [vmem:[#allocation3 + $0xa8] sm:$0xff] }
  0x83   :  { %1181 = vmatmul.mubr.bf16.gmra.mrb[4].mxu0 %v255_v30  ;;  %v2968_v30 = vld [vmem:[#allocation6 + $0x260] ss:$8 sps:$4 sm:$0xff]  }
  0x84   :  { %1304 = vmatpush1.bf16.msra.mxu0 %v2950_v31  ;;  %1190 = vmatprep.mubr.bf16.mxu0 %v263_v35  ;;  %v277_v31 = vpack.c.bf16 %v137_v23, %v130_v16  ;;  %v3039_v35 = vld [vmem:[#allocation6 + $0xe0] ss:$8 sps:$4 sm:$0xff]   ;;  %v165_v16 = vld [vmem:[#allocation3 + $0x2f0] sm:$0xff] }
  0x85   :  { %1305 = vmatprep.subr.bf16.mxu0 %v2955_v33  ;;  %v2976_v33 = vld [vmem:[#allocation6 + $0x274] ss:$8 sps:$4 sm:$0xff]   ;;  %1006 = vmatpush1.bf16.msra.mxu1 %v3039_v35 }
  0x86   :  { %1007 = vmatprep.subr.bf16.mxu1 %v3040_v38  ;;  %v85_v23 = vld [vmem:[#allocation3 + $0x70] sm:$0xff] }
  0x87   :  { %v3000_v35 = vld [vmem:[#allocation6 + $0x2b4] ss:$8 sps:$4 sm:$0xff]   ;;  %v253_v38 = vpack.c.bf16 %v92_v24, %v85_v23 }
  0x88   :  { %1306 = vmatpush1.bf16.msra.mxu0 %v2953_v41  ;;  %v129_v41 = vld [vmem:[#allocation3 + $0x1d0] sm:$0xff] }
  0x89   :  { %1307 = vmatprep.subr.bf16.mxu0 %v2958_v47  ;;  %v144_v47 = vld [vmem:[#allocation3 + $0x248] sm:$0xff]  ;;  %1008 = vmatpush1.bf16.msra.mxu1 %v3042_v51  ;;  %v3004_v51 = vld [vmem:[#allocation6 + $0x2c0] ss:$8 sps:$4 sm:$0xff]  }
  0x8a   :  { %v284_v58 = vpack.c.bf16 %v151_v49, %v144_v47  ;;  %2649 = vmatprep.subr.bf16.mxu1 %v3288_v1  ;;  %v3200_v1 = vmov 0   ;;  %v179_v47 = vld [vmem:[#allocation3 + $0x360] sm:$0xff] }
  0x8b   :  { %1191 = vmatmul.mubr.bf16.gmra.mrb[8].mxu0 %v262_v54  ;;  %v276_v54 = vpack.c.bf16 %v136_v44, %v129_v41  ;;  %2895 = vset.pattern.permute.xlu0 %v3200_v1  ;;  %v2998_v41 = vld [vmem:[#allocation6 + $0x2b0] ss:$8 sps:$4 sm:$0xff]   ;;  %v3006_v44 = vld [vmem:[#allocation6 + $0x2c4] ss:$8 sps:$4 sm:$0xff]  }
  0x8c   :  { %1308 = vmatpush1.bf16.msra.mxu0 %v2956_v55  ;;  %1200 = vmatprep.mubr.bf16.mxu0 %v270_v57  ;;  %v86_v55 = vld [vmem:[#allocation3 + $0x78] sm:$0xff]  ;;  %v99_v49 = vld [vmem:[#allocation3 + $0xe0] sm:$0xff] }
  0x8d   :  { %1309 = vmatprep.subr.bf16.mxu0 %v2964_v56  ;;  %v93_v56 = vld [vmem:[#allocation3 + $0xb0] sm:$0xff]  ;;  %v2980_v57 = vld [vmem:[#allocation6 + $0x280] ss:$8 sps:$4 sm:$0xff]   ;;  %1010 = vmatmul.mubr.bf16.vlgmr.msra.gmra.mrb[0].mxu1 %v246_v60 }
  0x8e   :  { %v254_v61 = vpack.c.bf16 %v93_v56, %v86_v55  ;;  %2665 = vmatpush1.bf16.msra.mxu1 %v3290_v2  ;;  %v157_v2 = vld [vmem:[#allocation3 + $0x2b0] sm:$0xff]  ;;  %v260_v56 = vpack.c.bf16 %v106_v52, %v99_v49  ;;  %v148_v49 = vld [vmem:[#allocation3 + $0x268] sm:$0xff] }
  0x8f   :  { %2650 = vmatprep.subr.bf16.mxu1 %v3293_v3  ;;  %v164_v3 = vld [vmem:[#allocation3 + $0x2e8] sm:$0xff] }
  0x90   :  { %1310 = vmatpush1.bf16.msra.mxu0 %v2962_v63  ;;  %v143_v63 = vld [vmem:[#allocation3 + $0x240] sm:$0xff]  ;;  %1019 = vmatprep.mubr.bf16.mxu1 %v254_v61  ;;  %v3012_v55 = vld [vmem:[#allocation6 + $0x2d4] ss:$8 sps:$4 sm:$0xff]  }
  0x91   :  { %1311 = vmatprep.subr.bf16.mxu0 %v2970_v15  ;;  %v158_v15 = vld [vmem:[#allocation3 + $0x2b8] sm:$0xff]  ;;  %v283_v26 = vpack.c.bf16 %v150_v0, %v143_v63  ;;  %v83_v63 = vld [vmem:[#allocation3 + $0x60] sm:$0xff]  ;;  %v128_v0 = vld [vmem:[#allocation3 + $0x1c8] sm:$0xff] }
  0x92   :  { %2666 = vmatpush1.bf16.msra.mxu1 %v3296_v4  ;;  %v290_v4 = vpack.c.bf16 %v164_v3, %v157_v2  ;;  %v3018_v61 = vld [vmem:[#allocation6 + $0x2e4] ss:$8 sps:$4 sm:$0xff]   ;;  %v156_v52 = vld [vmem:[#allocation3 + $0x2a8] sm:$0xff] }
  0x93   :  { %1201 = vmatmul.mubr.bf16.gmra.mrb[12].mxu0 %v269_v28  ;;  %v100_v28 = vld [vmem:[#allocation3 + $0xe8] sm:$0xff]  ;;  %2651 = vmatprep.subr.bf16.mxu1 %v3299_v5 }
  0x94   :  { %1312 = vmatpush1.bf16.msra.mxu0 %v2968_v30  ;;  %1210 = vmatprep.mubr.bf16.mxu0 %v277_v31  ;;  %v107_v30 = vld [vmem:[#allocation3 + $0x120] sm:$0xff] }
  0x95   :  { %1313 = vmatprep.subr.bf16.mxu0 %v2976_v33  ;;  %v2992_v31 = vld [vmem:[#allocation6 + $0x2a0] ss:$8 sps:$4 sm:$0xff]   ;;  %v291_v33 = vpack.c.bf16 %v165_v16, %v158_v15  ;;  %1020 = vmatmul.mubr.bf16.gmra.mrb[4].mxu1 %v253_v38 }
  0x96   :  { %2667 = vmatpush1.bf16.msra.mxu1 %v3302_v6  ;;  %v113_v6 = vld [vmem:[#allocation3 + $0x150] sm:$0xff]  ;;  %v3016_v15 = vld [vmem:[#allocation6 + $0x2e0] ss:$8 sps:$4 sm:$0xff]  }
  0x97   :  { %2652 = vmatprep.subr.bf16.mxu1 %v3305_v7  ;;  %v120_v7 = vld [vmem:[#allocation3 + $0x188] sm:$0xff] }
  0x98   :  { %1314 = vmatpush1.bf16.msra.mxu0 %v2974_v40  ;;  %v261_v40 = vpack.c.bf16 %v107_v30, %v100_v28  ;;  %v75_v28 = vld [vmem:[#allocation3 + $0x20] sm:$0xff]  ;;  %v82_v30 = vld [vmem:[#allocation3 + $0x58] sm:$0xff] }
  0x99   :  { %1315 = vmatprep.subr.bf16.mxu0 %v2982_v45  ;;  %v172_v45 = vld [vmem:[#allocation3 + $0x328] sm:$0xff]  ;;  %v250_v38 = vpack.c.bf16 %v82_v30, %v75_v28  ;;  %v205_v28 = vld [vmem:[#allocation3 + $0x430] sm:$0xff] }
  0x9a   :  { %1029 = vmatprep.mubr.bf16.mxu1 %v261_v40  ;;  %v298_v5 = vpack.c.bf16 %v179_v47, %v172_v45  ;;  %2668 = vmatpush1.bf16.msra.mxu1 %v3308_v8  ;;  %v3024_v8 = vld [vmem:[#allocation6 + $0x2f4] ss:$8 sps:$4 sm:$0xff]   ;;  %v111_v47 = vld [vmem:[#allocation3 + $0x140] sm:$0xff] }
  0x9b   :  { %1211 = vmatmul.mubr.bf16.gmra.mrb[16].mxu0 %v276_v54  ;;  %v121_v54 = vld [vmem:[#allocation3 + $0x190] sm:$0xff]  ;;  %2653 = vmatprep.subr.bf16.mxu1 %v3311_v9  ;;  %v267_v9 = vpack.c.bf16 %v120_v7, %v113_v6  ;;  %v104_v45 = vld [vmem:[#allocation3 + $0x108] sm:$0xff]  ;;  %v139_v6 = vld [vmem:[#allocation3 + $0x220] sm:$0xff] }
  0x9c   :  { %1316 = vmatpush1.bf16.msra.mxu0 %v2980_v57  ;;  %1220 = vmatprep.mubr.bf16.mxu0 %v284_v58  ;;  %v3010_v57 = vld [vmem:[#allocation6 + $0x2d0] ss:$8 sps:$4 sm:$0xff]   ;;  %v171_v58 = vld [vmem:[#allocation3 + $0x320] sm:$0xff]  ;;  %v268_v60 = vpack.c.bf16 %v121_v54, %v114_v53 }
  0x9d   :  { %1317 = vmatprep.subr.bf16.mxu0 %v2988_v59  ;;  %v178_v59 = vld [vmem:[#allocation3 + $0x358] sm:$0xff]  ;;  %1030 = vmatmul.mubr.bf16.gmra.mrb[8].mxu1 %v260_v56  ;;  %v149_v40 = vld [vmem:[#allocation3 + $0x270] sm:$0xff]  ;;  %v163_v53 = vld [vmem:[#allocation3 + $0x2e0] sm:$0xff] }
  0x9e   :  { %1039 = vmatprep.mubr.bf16.mxu1 %v268_v60  ;;  %2669 = vmatpush1.bf16.msra.mxu1 %v3314_v10  ;;  %v297_v16 = vpack.c.bf16 %v178_v59, %v171_v58  ;;  %v3033_v10 = vld [vmem:[#allocation6 + $0x304] ss:$8 sps:$4 sm:$0xff]   ;;  %v125_v56 = vld [vmem:[#allocation3 + $0x1b0] sm:$0xff]  ;;  %v176_v7 = vld [vmem:[#allocation3 + $0x348] sm:$0xff] }
  0x9f   :  { %2654 = vmatprep.subr.bf16.mxu1 %v3317_v11  ;;  %v127_v11 = vld [vmem:[#allocation3 + $0x1c0] sm:$0xff]  ;;  %v170_v58 = vld [vmem:[#allocation3 + $0x318] sm:$0xff]  ;;  %v177_v59 = vld [vmem:[#allocation3 + $0x350] sm:$0xff] }
  0xa0   :  { %1318 = vmatpush1.bf16.msra.mxu0 %v2986_v62  ;;  %v76_v62 = vld [vmem:[#allocation3 + $0x28] sm:$0xff] }
  0xa1   :  { %1319 = vmatprep.subr.bf16.mxu0 %v2994_v14  ;;  %v135_v14 = vld [vmem:[#allocation3 + $0x200] sm:$0xff]  ;;  %v251_v23 = vpack.c.bf16 %v83_v63, %v76_v62  ;;  %v124_v62 = vld [vmem:[#allocation3 + $0x1a8] sm:$0xff] }
  0xa2   :  { %v275_v24 = vpack.c.bf16 %v135_v14, %v128_v0  ;;  %2670 = vmatpush1.bf16.msra.mxu1 %v3320_v12  ;;  %v142_v12 = vld [vmem:[#allocation3 + $0x238] sm:$0xff]  ;;  %v132_v63 = vld [vmem:[#allocation3 + $0x1e8] sm:$0xff]  ;;  %v191_v14 = vld [vmem:[#allocation3 + $0x3c0] sm:$0xff] }
  0xa3   :  { %1221 = vmatmul.mubr.bf16.gmra.mrb[20].mxu0 %v283_v26  ;;  %v3022_v26 = vld [vmem:[#allocation6 + $0x2f0] ss:$8 sps:$4 sm:$0xff]   ;;  %2655 = vmatprep.subr.bf16.mxu1 %v3323_v13  ;;  %v3031_v13 = vld [vmem:[#allocation6 + $0x300] ss:$8 sps:$4 sm:$0xff]   ;;  %v282_v3 = vpack.c.bf16 %v149_v40, %v142_v12 }
  0xa4   :  { %1320 = vmatpush1.bf16.msra.mxu0 %v2992_v31  ;;  %1230 = vmatprep.mubr.bf16.mxu0 %v291_v33  ;;  %v90_v31 = vld [vmem:[#allocation3 + $0x98] sm:$0xff]  ;;  %v97_v33 = vld [vmem:[#allocation3 + $0xd0] sm:$0xff]  ;;  %v184_v0 = vld [vmem:[#allocation3 + $0x388] sm:$0xff] }
  0xa5   :  { %1321 = vmatprep.subr.bf16.mxu0 %v3000_v35  ;;  %1040 = vmatmul.mubr.bf16.gmra.mrb[12].mxu1 %v267_v9  ;;  %v134_v35 = vld [vmem:[#allocation3 + $0x1f8] sm:$0xff]  ;;  %v153_v9 = vld [vmem:[#allocation3 + $0x290] sm:$0xff]  ;;  %v212_v12 = vld [vmem:[#allocation3 + $0x468] sm:$0xff] }
  0xa6   :  { %1049 = vmatprep.mubr.bf16.mxu1 %v275_v24  ;;  %2671 = vmatpush1.bf16.msra.mxu1 %v3326_v17  ;;  %v274_v2 = vpack.c.bf16 %v134_v35, %v127_v11  ;;  %v96_v17 = vld [vmem:[#allocation3 + $0xc8] sm:$0xff]  ;;  %v190_v24 = vld [vmem:[#allocation3 + $0x3b8] sm:$0xff]  ;;  %v167_v11 = vld [vmem:[#allocation3 + $0x300] sm:$0xff] }
  0xa7   :  { %2656 = vmatprep.subr.bf16.mxu1 %v3329_v18  ;;  %v141_v18 = vld [vmem:[#allocation3 + $0x230] sm:$0xff]  ;;  %v219_v40 = vld [vmem:[#allocation3 + $0x4a0] sm:$0xff] }
  0xa8   :  { %1322 = vmatpush1.bf16.msra.mxu0 %v2998_v41  ;;  %v258_v41 = vpack.c.bf16 %v97_v33, %v90_v31  ;;  %v281_v54 = vpack.c.bf16 %v148_v49, %v141_v18  ;;  %v152_v31 = vld [vmem:[#allocation3 + $0x288] sm:$0xff]  ;;  %v197_v35 = vld [vmem:[#allocation3 + $0x3f0] sm:$0xff]  ;;  %v226_v18 = vld [vmem:[#allocation3 + $0x4d8] sm:$0xff] }
  0xa9   :  { %1323 = vmatprep.subr.bf16.mxu0 %v3006_v44  ;;  %v89_v44 = vld [vmem:[#allocation3 + $0x90] sm:$0xff]  ;;  %v160_v33 = vld [vmem:[#allocation3 + $0x2c8] sm:$0xff] }
  0xaa   :  { %2672 = vmatpush1.bf16.msra.mxu1 %v3332_v19  ;;  %v265_v19 = vpack.c.bf16 %v111_v47, %v104_v45  ;;  %v218_v45 = vld [vmem:[#allocation3 + $0x498] sm:$0xff]  ;;  %v233_v49 = vld [vmem:[#allocation3 + $0x510] sm:$0xff] }
  0xab   :  { %1231 = vmatmul.mubr.bf16.gmra.mrb[24].mxu0 %v290_v4  ;;  %2657 = vmatprep.subr.bf16.mxu1 %v3335_v20  ;;  %v289_v20 = vpack.c.bf16 %v163_v53, %v156_v52  ;;  %v103_v4 = vld [vmem:[#allocation3 + $0x100] sm:$0xff]  ;;  %v324_v53 = vpack.c.bf16 %v233_v49, %v226_v18 }
  0xac   :  { %1324 = vmatpush1.bf16.msra.mxu0 %v3004_v51  ;;  %1240 = vmatprep.mubr.bf16.mxu0 %v298_v5  ;;  %v257_v51 = vpack.c.bf16 %v96_v17, %v89_v44  ;;  %v118_v5 = vld [vmem:[#allocation3 + $0x178] sm:$0xff]  ;;  %v181_v44 = vld [vmem:[#allocation3 + $0x370] sm:$0xff]  ;;  %v211_v17 = vld [vmem:[#allocation3 + $0x460] sm:$0xff] }
  0xad   :  { %1325 = vmatprep.subr.bf16.mxu0 %v3012_v55  ;;  %1050 = vmatmul.mubr.bf16.gmra.mrb[16].mxu1 %v274_v2  ;;  %v110_v55 = vld [vmem:[#allocation3 + $0x138] sm:$0xff]  ;;  %v159_v2 = vld [vmem:[#allocation3 + $0x2c0] sm:$0xff]  ;;  %v316_v52 = vpack.c.bf16 %v218_v45, %v211_v17  ;;  %v244_v17 = vld [vmem:[#allocation3 + $0x568] sm:$0xff] }
  0xae   :  { %1059 = vmatprep.mubr.bf16.mxu1 %v282_v3  ;;  %2673 = vmatpush1.bf16.msra.mxu1 %v3338_v21  ;;  %v155_v21 = vld [vmem:[#allocation3 + $0x2a0] sm:$0xff]  ;;  %v174_v3 = vld [vmem:[#allocation3 + $0x338] sm:$0xff]  ;;  %v213_v45 = vld [vmem:[#allocation3 + $0x470] sm:$0xff] }
  0xaf   :  { %2658 = vmatprep.subr.bf16.mxu1 %v3340_v22  ;;  %v264_v22 = vpack.c.bf16 %v110_v55, %v103_v4  ;;  %v195_v4 = vld [vmem:[#allocation3 + $0x3e0] sm:$0xff]  ;;  %v225_v55 = vld [vmem:[#allocation3 + $0x4d0] sm:$0xff] }
  0xb0   :  { %1326 = vmatpush1.bf16.msra.mxu0 %v3010_v57  ;;  %v162_v57 = vld [vmem:[#allocation3 + $0x2d8] sm:$0xff] }
  0xb1   :  { %1327 = vmatprep.subr.bf16.mxu0 %v3018_v61  ;;  %v288_v60 = vpack.c.bf16 %v162_v57, %v155_v21  ;;  %v296_v61 = vpack.c.bf16 %v177_v59, %v170_v58  ;;  %v240_v21 = vld [vmem:[#allocation3 + $0x548] sm:$0xff]  ;;  %v187_v59 = vld [vmem:[#allocation3 + $0x3a0] sm:$0xff] }
  0xb2   :  { %2674 = vmatpush1.bf16.msra.mxu1 %v3344_v25  ;;  %v272_v25 = vpack.c.bf16 %v125_v56, %v118_v5  ;;  %v232_v5 = vld [vmem:[#allocation3 + $0x508] sm:$0xff]  ;;  %v331_v58 = vpack.c.bf16 %v240_v21, %v240_v21  ;;  %v3052_v18 = vld [vmem:[#allocation8 + $0x30] ss:$8 sps:$4 sm:$0xff]  }
  0xb3   :  { %1241 = vmatmul.mubr.bf16.gmra.mrb[28].mxu0 %v297_v16  ;;  %2659 = vmatprep.subr.bf16.mxu1 %v3347_v27  ;;  %v117_v27 = vld [vmem:[#allocation3 + $0x170] sm:$0xff]  ;;  %v303_v16 = vpack.c.bf16 %v191_v14, %v184_v0  ;;  %v208_v14 = vld [vmem:[#allocation3 + $0x448] sm:$0xff]  ;;  %v234_v21 = vld [vmem:[#allocation3 + $0x518] sm:$0xff] }
  0xb4   :  { %1328 = vmatpush1.bf16.msra.mxu0 %v3016_v15  ;;  %1331 = vmatprep.mubr.bf16.mxu0 %v251_v23  ;;  %v146_v23 = vld [vmem:[#allocation3 + $0x258] sm:$0xff]  ;;  %v201_v0 = vld [vmem:[#allocation3 + $0x410] sm:$0xff] }
  0xb5   :  { %1329 = vmatprep.subr.bf16.mxu0 %v3024_v8  ;;  %1060 = vmatmul.mubr.bf16.gmra.mrb[20].mxu1 %v281_v54  ;;  %v138_v8 = vld [vmem:[#allocation3 + $0x218] sm:$0xff]  ;;  %v180_v54 = vld [vmem:[#allocation3 + $0x368] sm:$0xff] }
  0xb6   :  { %1069 = vmatprep.mubr.bf16.mxu1 %v289_v20  ;;  %2675 = vmatpush1.bf16.msra.mxu1 %v3349_v29  ;;  %v169_v29 = vld [vmem:[#allocation3 + $0x310] sm:$0xff]  ;;  %v188_v20 = vld [vmem:[#allocation3 + $0x3a8] sm:$0xff] }
  0xb7   :  { %2660 = vmatprep.subr.bf16.mxu1 %v3353_v32  ;;  %v271_v32 = vpack.c.bf16 %v124_v62, %v117_v27  ;;  %v295_v15 = vpack.c.bf16 %v176_v7, %v169_v29  ;;  %v307_v57 = vpack.c.bf16 %v195_v4, %v188_v20  ;;  %v239_v27 = vld [vmem:[#allocation3 + $0x540] sm:$0xff]  ;;  %v3055_v4 = vld [vmem:[#allocation8 + $0x40] ss:$8 sps:$4 sm:$0xff]  }
  0xb8   :  { %1330 = vmatpush1.bf16.msra.mxu0 %v3022_v26  ;;  %v198_v26 = vld [vmem:[#allocation3 + $0x3f8] sm:$0xff]  ;;  %v330_v7 = vpack.c.bf16 %v239_v27, %v239_v27 }
  0xb9   :  { %1460 = vmatprep.subr.bf16.mxu0 %v3033_v10  ;;  %v310_v10 = vpack.c.bf16 %v205_v28, %v198_v26  ;;  %v3043_v26 = vld [vmem:[#allocation8] ss:$8 sps:$4 sm:$0xff]   ;;  %v3045_v28 = vld [vmem:[#allocation8 + $0x4] ss:$8 sps:$4 sm:$0xff]   ;;  %v3066_v27 = vld [vmem:[#allocation8 + $0x74] ss:$8 sps:$4 sm:$0xff]  }
  0xba   :  { %2676 = vmatpush1.bf16.msra.mxu1 %v3356_v34  ;;  %v279_v34 = vpack.c.bf16 %v139_v6, %v132_v63  ;;  %v186_v63 = vld [vmem:[#allocation3 + $0x398] sm:$0xff]  ;;  %v193_v6 = vld [vmem:[#allocation3 + $0x3d0] sm:$0xff] }
  0xbb   :  { %1332 = vmatmul.mubr.bf16.vlgmr.msra.gmra.mrb[0].mxu0 %v250_v38  ;;  %2661 = vmatprep.subr.bf16.mxu1 %v3359_v36  ;;  %v131_v36 = vld [vmem:[#allocation3 + $0x1e0] sm:$0xff] }
  0xbc   :  { %1461 = vmatpush1.bf16.msra.mxu0 %v3031_v13  ;;  %1341 = vmatprep.mubr.bf16.mxu0 %v258_v41  ;;  %v293_v13 = vpack.c.bf16 %v167_v11, %v160_v33  ;;  %v317_v41 = vpack.c.bf16 %v219_v40, %v212_v12  ;;  %v199_v33 = vld [vmem:[#allocation3 + $0x400] sm:$0xff]  ;;  %v206_v11 = vld [vmem:[#allocation3 + $0x438] sm:$0xff]  ;;  %v221_v12 = vld [vmem:[#allocation3 + $0x4b0] sm:$0xff] }
  0xbd   :  { %1070 = vmatmul.mubr.bf16.gmra.mrb[24].mxu1 %v288_v60  ;;  %v202_v60 = vld [vmem:[#allocation3 + $0x418] sm:$0xff]  ;;  %v3051_v40 = vld [vmem:[#allocation8 + $0x24] ss:$8 sps:$4 sm:$0xff]  }
  0xbe   :  { %1079 = vmatprep.mubr.bf16.mxu1 %v296_v61  ;;  %2677 = vmatpush1.bf16.msra.mxu1 %v3361_v37  ;;  %v183_v37 = vld [vmem:[#allocation3 + $0x380] sm:$0xff]  ;;  %v209_v61 = vld [vmem:[#allocation3 + $0x450] sm:$0xff] }
  0xbf   :  { %2662 = vmatprep.subr.bf16.mxu1 %v3364_v39  ;;  %v278_v39 = vpack.c.bf16 %v138_v8, %v131_v36  ;;  %v302_v30 = vpack.c.bf16 %v190_v24, %v183_v37  ;;  %v314_v29 = vpack.c.bf16 %v209_v61, %v202_v60  ;;  %v192_v36 = vld [vmem:[#allocation3 + $0x3c8] sm:$0xff]  ;;  %v313_v8 = vpack.c.bf16 %v208_v14, %v201_v0 }
  0xc0   :  { %v3061_v61 = vld [vmem:[#allocation8 + $0x60] ss:$8 sps:$4 sm:$0xff]  }
  0xc1   :  { %v3067_v14 = vld [vmem:[#allocation8 + $0x80] ss:$8 sps:$4 sm:$0xff]  }
  0xc2   :  { %2678 = vmatpush1.bf16.msra.mxu1 %v3367_v42  ;;  %v286_v42 = vpack.c.bf16 %v153_v9, %v146_v23  ;;  %v200_v23 = vld [vmem:[#allocation3 + $0x408] sm:$0xff]  ;;  %v207_v9 = vld [vmem:[#allocation3 + $0x440] sm:$0xff] }
  0xc3   :  { %1342 = vmatmul.mubr.bf16.gmra.mrb[4].mxu0 %v257_v51  ;;  %2663 = vmatprep.subr.bf16.mxu1 %v3370_v43  ;;  %v145_v43 = vld [vmem:[#allocation3 + $0x250] sm:$0xff]  ;;  %v300_v51 = vpack.c.bf16 %v181_v44, %v174_v3  ;;  %v236_v44 = vld [vmem:[#allocation3 + $0x528] sm:$0xff] }
  0xc4   :  { %1351 = vmatprep.mubr.bf16.mxu0 %v265_v19  ;;  %v285_v38 = vpack.c.bf16 %v152_v31, %v145_v43  ;;  %v173_v19 = vld [vmem:[#allocation3 + $0x330] sm:$0xff]  ;;  %v230_v43 = vld [vmem:[#allocation3 + $0x4f8] sm:$0xff] }
  0xc5   :  { %1080 = vmatmul.mubr.bf16.gmra.mrb[28].mxu1 %v295_v15  ;;  %v299_v56 = vpack.c.bf16 %v180_v54, %v173_v19  ;;  %v223_v15 = vld [vmem:[#allocation3 + $0x4c0] sm:$0xff]  ;;  %v237_v31 = vld [vmem:[#allocation3 + $0x530] sm:$0xff]  ;;  %v335_v19 = vpack.c.bf16 %v244_v17, %v244_v17 }
  0xc6   :  { %1089 = vmatprep.mubr.bf16.mxu1 %v303_v16  ;;  %2679 = vmatpush1.bf16.msra.mxu1 %v3374_v46  ;;  %v204_v46 = vld [vmem:[#allocation3 + $0x428] sm:$0xff]  ;;  %v185_v16 = vld [vmem:[#allocation3 + $0x390] sm:$0xff] }
  0xc7   :  { %2664 = vmatprep.subr.bf16.mxu1 %v3377_v48  ;;  %v309_v48 = vpack.c.bf16 %v204_v46, %v197_v35  ;;  %v304_v24 = vpack.c.bf16 %v192_v36, %v185_v16  ;;  %v3046_v35 = vld [vmem:[#allocation8 + $0x10] ss:$8 sps:$4 sm:$0xff]   ;;  %v229_v3 = vld [vmem:[#allocation3 + $0x4f0] sm:$0xff] }
  0xc8   :  { %v327_v49 = vpack.c.bf16 %v236_v44, %v229_v3  ;;  %v98_v16 = vld [vmem:[#allocation3 + $0xd8] sm:$0xff]  ;;  %v189_v3 = vld [vmem:[#allocation3 + $0x3b0] sm:$0xff]  ;;  %v196_v44 = vld [vmem:[#allocation3 + $0x3e8] sm:$0xff] }
  0xc9   :  { %v3070_v36 = vld [vmem:[#allocation8 + $0x90] ss:$8 sps:$4 sm:$0xff]   ;;  %v308_v17 = vpack.c.bf16 %v196_v44, %v189_v3 }
  0xca   :  { %2680 = vmatpush1.bf16.msra.mxu1 %v3379_v50  ;;  %v166_v50 = vld [vmem:[#allocation3 + $0x2f8] sm:$0xff] }
  0xcb   :  { %1352 = vmatmul.mubr.bf16.gmra.mrb[8].mxu0 %v264_v22  ;;  %v292_v47 = vpack.c.bf16 %v166_v50, %v159_v2  ;;  %v323_v22 = vpack.c.bf16 %v232_v5, %v225_v55  ;;  %2001 = vmatprep.subr.bf16.mxu1 %v3045_v28  ;;  %v3049_v2 = vld [vmem:[#allocation8 + $0x20] ss:$8 sps:$4 sm:$0xff]   ;;  %v3054_v50 = vld [vmem:[#allocation8 + $0x34] ss:$8 sps:$4 sm:$0xff]  }
  0xcc   :  { %1361 = vmatprep.mubr.bf16.mxu0 %v272_v25  ;;  %v194_v25 = vld [vmem:[#allocation3 + $0x3d8] sm:$0xff]  ;;  %v243_v5 = vld [vmem:[#allocation3 + $0x560] sm:$0xff] }
  0xcd   :  { %1090 = vmatmul.mubr.bf16.gmra.mrb[32].mxu1 %v302_v30  ;;  %v306_v62 = vpack.c.bf16 %v194_v25, %v187_v59  ;;  %v222_v30 = vld [vmem:[#allocation3 + $0x4b8] sm:$0xff]  ;;  %v3063_v59 = vld [vmem:[#allocation8 + $0x64] ss:$8 sps:$4 sm:$0xff]  }
  0xce   :  { %1099 = vmatprep.mubr.bf16.mxu1 %v310_v10  ;;  %v3048_v10 = vld [vmem:[#allocation8 + $0x14] ss:$8 sps:$4 sm:$0xff]  }
  0xcf   :  { %v3060_v55 = vld [vmem:[#allocation8 + $0x54] ss:$8 sps:$4 sm:$0xff]  }
  0xd3   :  { %1362 = vmatmul.mubr.bf16.gmra.mrb[12].mxu0 %v271_v32  ;;  %v305_v32 = vpack.c.bf16 %v193_v6, %v186_v63  ;;  %v84_v63 = vld [vmem:[#allocation3 + $0x68] sm:$0xff]  ;;  %v241_v6 = vld [vmem:[#allocation3 + $0x550] sm:$0xff] }
  0xd4   :  { %1371 = vmatprep.mubr.bf16.mxu0 %v279_v34  ;;  %v216_v34 = vld [vmem:[#allocation3 + $0x488] sm:$0xff]  ;;  %v332_v0 = vpack.c.bf16 %v241_v6, %v241_v6 }
  0xd5   :  { %1100 = vmatmul.mubr.bf16.gmra.mrb[36].mxu1 %v309_v48  ;;  %v321_v37 = vpack.c.bf16 %v223_v15, %v216_v34  ;;  %v311_v48 = vpack.c.bf16 %v206_v11, %v199_v33  ;;  %v3072_v34 = vld [vmem:[#allocation8 + $0x94] ss:$8 sps:$4 sm:$0xff]   ;;  %v133_v33 = vld [vmem:[#allocation3 + $0x1f0] sm:$0xff]  ;;  %v140_v11 = vld [vmem:[#allocation3 + $0x228] sm:$0xff] }
  0xd6   :  { %1109 = vmatprep.mubr.bf16.mxu1 %v317_v41  ;;  %v91_v15 = vld [vmem:[#allocation3 + $0xa0] sm:$0xff] }
  0xdb   :  { %1372 = vmatmul.mubr.bf16.gmra.mrb[16].mxu0 %v278_v39  ;;  %v312_v39 = vpack.c.bf16 %v207_v9, %v200_v23  ;;  %v3075_v23 = vld [vmem:[#allocation8 + $0xa4] ss:$8 sps:$4 sm:$0xff]   ;;  %v3073_v9 = vld [vmem:[#allocation8 + $0xa0] ss:$8 sps:$4 sm:$0xff]  }
  0xdc   :  { %1381 = vmatprep.mubr.bf16.mxu0 %v286_v42  ;;  %v215_v42 = vld [vmem:[#allocation3 + $0x480] sm:$0xff] }
  0xdd   :  { %1110 = vmatmul.mubr.bf16.gmra.mrb[40].mxu1 %v316_v52  ;;  %v320_v46 = vpack.c.bf16 %v222_v30, %v215_v42  ;;  %v235_v52 = vld [vmem:[#allocation3 + $0x520] sm:$0xff]  ;;  %v3081_v42 = vld [vmem:[#allocation8 + $0xc4] ss:$8 sps:$4 sm:$0xff]   ;;  %v3079_v30 = vld [vmem:[#allocation8 + $0xc0] ss:$8 sps:$4 sm:$0xff]  }
  0xde   :  { %1119 = vmatprep.mubr.bf16.mxu1 %v324_v53  ;;  %v3057_v53 = vld [vmem:[#allocation8 + $0x44] ss:$8 sps:$4 sm:$0xff]  }
  0xe3   :  { %1382 = vmatmul.mubr.bf16.gmra.mrb[20].mxu0 %v285_v38  ;;  %v214_v38 = vld [vmem:[#allocation3 + $0x478] sm:$0xff] }
  0xe4   :  { %1391 = vmatprep.mubr.bf16.mxu0 %v293_v13  ;;  %v328_v13 = vpack.c.bf16 %v237_v31, %v230_v43  ;;  %v319_v41 = vpack.c.bf16 %v221_v12, %v214_v38  ;;  %v126_v43 = vld [vmem:[#allocation3 + $0x1b8] sm:$0xff] }
  0xe5   :  { %1120 = vmatmul.mubr.bf16.gmra.mrb[44].mxu1 %v323_v22  ;;  %v334_v22 = vpack.c.bf16 %v243_v5, %v243_v5  ;;  %v154_v38 = vld [vmem:[#allocation3 + $0x298] sm:$0xff] }
  0xe6   :  { %1129 = vmatprep.mubr.bf16.mxu1 %v331_v58  ;;  %v242_v58 = vld [vmem:[#allocation3 + $0x558] sm:$0xff] }
  0xe7   :  { %v333_v60 = vpack.c.bf16 %v242_v58, %v242_v58  ;;  %v3084_v5 = vld [vmem:[#allocation8 + $0xd4] ss:$8 sps:$4 sm:$0xff]  }
  0xeb   :  { %1392 = vmatmul.mubr.bf16.gmra.mrb[24].mxu0 %v292_v47  ;;  %v220_v47 = vld [vmem:[#allocation3 + $0x4a8] sm:$0xff] }
  0xec   :  { %1401 = vmatprep.mubr.bf16.mxu0 %v300_v51  ;;  %v228_v51 = vld [vmem:[#allocation3 + $0x4e8] sm:$0xff]  ;;  %v318_v54 = vpack.c.bf16 %v220_v47, %v213_v45  ;;  %v203_v45 = vld [vmem:[#allocation3 + $0x420] sm:$0xff]  ;;  %v210_v47 = vld [vmem:[#allocation3 + $0x458] sm:$0xff] }
  0xed   :  { %1130 = vmatmul.mubr.bf16.gmra.mrb[48].mxu1 %v330_v7  ;;  %v326_v20 = vpack.c.bf16 %v235_v52, %v228_v51  ;;  %v224_v51 = vld [vmem:[#allocation3 + $0x4c8] sm:$0xff] }
  0xee   :  { %1250 = vmatprep.mubr.bf16.mxu1 %v305_v32  ;;  %v3069_v32 = vld [vmem:[#allocation8 + $0x84] ss:$8 sps:$4 sm:$0xff]  }
  0xf3   :  { %1402 = vmatmul.mubr.bf16.gmra.mrb[28].mxu0 %v299_v56  ;;  %v227_v56 = vld [vmem:[#allocation3 + $0x4e0] sm:$0xff] }
  0xf4   :  { %1411 = vmatprep.mubr.bf16.mxu0 %v307_v57  ;;  %v3058_v57 = vld [vmem:[#allocation8 + $0x50] ss:$8 sps:$4 sm:$0xff]   ;;  %v325_v25 = vpack.c.bf16 %v234_v21, %v227_v56 }
  0xf5   :  { %1251 = vmatmul.mubr.bf16.vlgmr.msra.gmra.mrb[32].mxu1 %v304_v24  ;;  %v105_v24 = vld [vmem:[#allocation3 + $0x110] sm:$0xff]  ;;  %v3082_v56 = vld [vmem:[#allocation8 + $0xd0] ss:$8 sps:$4 sm:$0xff]  }
  0xf6   :  { %1260 = vmatprep.mubr.bf16.mxu1 %v312_v39  ;;  %2002 = vmatpush1.bf16.msra.mxu1 %v3043_v26  ;;  %v112_v39 = vld [vmem:[#allocation3 + $0x148] sm:$0xff]  ;;  %v3076_v26 = vld [vmem:[#allocation8 + $0xb0] ss:$8 sps:$4 sm:$0xff]  }
  0xf7   :  { %2003 = vmatprep.subr.bf16.mxu1 %v3048_v10  ;;  %v266_v28 = vpack.c.bf16 %v112_v39, %v105_v24  ;;  %v119_v10 = vld [vmem:[#allocation3 + $0x180] sm:$0xff] }
  0xf8   :  { %v273_v31 = vpack.c.bf16 %v126_v43, %v119_v10 }
  0xfa   :  { %2004 = vmatpush1.bf16.msra.mxu1 %v3046_v35  ;;  %v280_v35 = vpack.c.bf16 %v140_v11, %v133_v33 }
  0xfb   :  { %1412 = vmatmul.mubr.bf16.gmra.mrb[32].mxu0 %v306_v62  ;;  %2005 = vmatprep.subr.bf16.mxu1 %v3051_v40  ;;  %v77_v62 = vld [vmem:[#allocation3 + $0x30] sm:$0xff] }
  0xfc   :  { %1421 = vmatprep.mubr.bf16.mxu0 %v314_v29  ;;  %v3064_v29 = vld [vmem:[#allocation8 + $0x70] ss:$8 sps:$4 sm:$0xff]   ;;  %v252_v7 = vpack.c.bf16 %v84_v63, %v77_v62  ;;  %v161_v40 = vld [vmem:[#allocation3 + $0x2d0] sm:$0xff] }
  0xfd   :  { %1261 = vmatmul.mubr.bf16.gmra.mrb[36].mxu1 %v311_v48  ;;  %v3088_v62 = vld [vmem:[#allocation8 + $0xf0] ss:$8 sps:$4 sm:$0xff]  }
  0xfe   :  { %1270 = vmatprep.mubr.bf16.mxu1 %v319_v41  ;;  %2006 = vmatpush1.bf16.msra.mxu1 %v3049_v2  ;;  %v175_v41 = vld [vmem:[#allocation3 + $0x340] sm:$0xff]  ;;  %v182_v2 = vld [vmem:[#allocation3 + $0x378] sm:$0xff] }
  0xff   :  { %2007 = vmatprep.subr.bf16.mxu1 %v3054_v50  ;;  %v301_v50 = vpack.c.bf16 %v182_v2, %v175_v41 }
 0x102   :  { %2008 = vmatpush1.bf16.msra.mxu1 %v3052_v18  ;;  %v315_v18 = vpack.c.bf16 %v210_v47, %v203_v45  ;;  %v435_v45 = vld [vmem:[%s3746_s2] sm:$0x3] }
 0x103   :  { %1422 = vmatmul.mubr.bf16.gmra.mrb[36].mxu0 %v313_v8  ;;  %2009 = vmatprep.subr.bf16.mxu1 %v3057_v53  ;;  %v259_v8 = vpack.c.bf16 %v98_v16, %v91_v15 }
 0x104   :  { %1431 = vmatprep.mubr.bf16.mxu0 %v321_v37  ;;  %v3078_v37 = vld [vmem:[#allocation8 + $0xb4] ss:$8 sps:$4 sm:$0xff]  }
 0x105   :  { %1271 = vmatmul.mubr.bf16.gmra.mrb[40].mxu1 %v318_v54 }
 0x106   :  { %1280 = vmatprep.mubr.bf16.mxu1 %v326_v20  ;;  %2010 = vmatpush1.bf16.msra.mxu1 %v3055_v4  ;;  %v231_v4 = vld [vmem:[#allocation3 + $0x500] sm:$0xff] }
 0x107   :  { %2011 = vmatprep.subr.bf16.mxu1 %v3060_v55  ;;  %v238_v55 = vld [vmem:[#allocation3 + $0x538] sm:$0xff] }
 0x108   :  { %v329_v21 = vpack.c.bf16 %v238_v55, %v231_v4 }
 0x10a   :  { %2012 = vmatpush1.bf16.msra.mxu1 %v3058_v57 }
 0x10b   :  { %1432 = vmatmul.mubr.bf16.gmra.mrb[40].mxu0 %v320_v46  ;;  %2013 = vmatprep.subr.bf16.mxu1 %v3063_v59  ;;  %v147_v46 = vld [vmem:[#allocation3 + $0x260] sm:$0xff]  ;;  %v3085_v59 = vld [vmem:[#allocation8 + $0xe0] ss:$8 sps:$4 sm:$0xff]  }
 0x10c   :  { %1441 = vmatprep.mubr.bf16.mxu0 %v328_v13  ;;  %v287_v12 = vpack.c.bf16 %v154_v38, %v147_v46  ;;  %v168_v13 = vld [vmem:[#allocation3 + $0x308] sm:$0xff] }
 0x10d   :  { %1281 = vmatmul.mubr.bf16.gmra.mrb[44].mxu1 %v325_v25  ;;  %v294_v48 = vpack.c.bf16 %v168_v13, %v161_v40 }
 0x10e   :  { %1290 = vmatprep.mubr.bf16.mxu1 %v333_v60  ;;  %2014 = vmatpush1.bf16.msra.mxu1 %v3061_v61  ;;  %v245_v61 = vld [vmem:[#allocation3 + $0x570] sm:$0xff] }
 0x10f   :  { %2015 = vmatprep.subr.bf16.mxu1 %v3066_v27  ;;  %v3090_v27 = vld [vmem:[#allocation8 + $0xf4] ss:$8 sps:$4 sm:$0xff]   ;;  %v336_v63 = vpack.c.bf16 %v245_v61, %v245_v61 }
 0x112   :  { %2016 = vmatpush1.bf16.msra.mxu1 %v3064_v29 }
 0x113   :  { %1442 = vmatmul.mubr.bf16.gmra.mrb[44].mxu0 %v327_v49  ;;  %2017 = vmatprep.subr.bf16.mxu1 %v3069_v32  ;;  %v217_v49 = vld [vmem:[#allocation3 + $0x490] sm:$0xff] }
 0x114   :  { %1451 = vmatprep.mubr.bf16.mxu0 %v335_v19  ;;  %v322_v52 = vpack.c.bf16 %v224_v51, %v217_v49 }
 0x115   :  { %1291 = vmatmul.mubr.bf16.gmra.mrb[48].mxu1 %v332_v0 }
 0x116   :  { %2018 = vmatpush1.bf16.msra.mxu1 %v3067_v14 }
 0x117   :  { %2019 = vmatprep.subr.bf16.mxu1 %v3072_v34 }
 0x11a   :  { %2020 = vmatpush1.bf16.msra.mxu1 %v3070_v36 }
 0x11b   :  { %1452 = vmatmul.mubr.bf16.gmra.mrb[48].mxu0 %v334_v22  ;;  %2021 = vmatprep.subr.bf16.mxu1 %v3075_v23  ;;  %v3087_v22 = vld [vmem:[#allocation8 + $0xe4] ss:$8 sps:$4 sm:$0xff]  }
 0x11c   :  { %1492 = vmatprep.mubr.bf16.mxu0 %v3200_v1 }
 0x11e   :  { %2022 = vmatpush1.bf16.msra.mxu1 %v3073_v9 }
 0x11f   :  { %2023 = vmatprep.subr.bf16.mxu1 %v3078_v37 }
 0x122   :  { %2024 = vmatpush1.bf16.msra.mxu1 %v3076_v26 }
 0x123   :  { %2554 = vmatmul.mubr.msk.bf16.vlgmr.msra.gmra.mrb[0].mxu0 %vm937_vm0, %v252_v7  ;;  %2025 = vmatprep.subr.bf16.mxu1 %v3081_v42 }
 0x124   :  { %1502 = vmatprep.mubr.bf16.mxu0 %v3200_v1 }
 0x126   :  { %2026 = vmatpush1.bf16.msra.mxu1 %v3079_v30 }
 0x127   :  { %2027 = vmatprep.subr.bf16.mxu1 %v3084_v5 }
 0x12a   :  { %2028 = vmatpush1.bf16.msra.mxu1 %v3082_v56 }
 0x12b   :  { %2555 = vmatmul.mubr.msk.bf16.gmra.mrb[4].mxu0 %vm937_vm0, %v259_v8  ;;  %2029 = vmatprep.subr.bf16.mxu1 %v3087_v22 }
 0x12c   :  { %1512 = vmatprep.mubr.bf16.mxu0 %v3200_v1 }
 0x12e   :  { %2030 = vmatpush1.bf16.msra.mxu1 %v3085_v59 }
 0x12f   :  { %2031 = vmatprep.subr.bf16.mxu1 %v3090_v27 }
 0x132   :  { %2032 = vmatpush1.bf16.msra.mxu1 %v3088_v62 }
 0x133   :  { %2556 = vmatmul.mubr.msk.bf16.gmra.mrb[8].mxu0 %vm937_vm0, %v266_v28 }
 0x134   :  { %1522 = vmatprep.mubr.bf16.mxu0 %v3200_v1 }
 0x13b   :  { %2557 = vmatmul.mubr.msk.bf16.gmra.mrb[12].mxu0 %vm937_vm0, %v273_v31 }
 0x13c   :  { %1532 = vmatprep.mubr.bf16.mxu0 %v3200_v1 }
 0x143   :  { %2558 = vmatmul.mubr.msk.bf16.gmra.mrb[16].mxu0 %vm937_vm0, %v280_v35 }
 0x144   :  { %1542 = vmatprep.mubr.bf16.mxu0 %v3200_v1 }
 0x14b   :  { %2559 = vmatmul.mubr.msk.bf16.gmra.mrb[20].mxu0 %vm937_vm0, %v287_v12 }
 0x14c   :  { %1552 = vmatprep.mubr.bf16.mxu0 %v3200_v1 }
 0x153   :  { %2560 = vmatmul.mubr.msk.bf16.gmra.mrb[24].mxu0 %vm937_vm0, %v294_v48  ;;  %v3752_v48 = vlaneseq }
 0x154   :  { %1562 = vmatprep.mubr.bf16.mxu0 %v3200_v1 }
 0x155   :  { %v3526_v2 = vshrl.u32 %v3752_v48, 7 }
 0x157   :  { %3758 = vst [vmem:[#allocation13_spill] sm:$0xff] %v3526_v2  ;;  %v3541_v47 = vsub.s32 1, %v3526_v2 }
 0x159   :  { %3760 = vst [vmem:[#allocation15_spill] sm:$0xff] %v3541_v47 }
 0x15b   :  { %2561 = vmatmul.mubr.msk.bf16.gmra.mrb[28].mxu0 %vm937_vm0, %v301_v50 }
 0x15c   :  { %1572 = vmatprep.mubr.bf16.mxu0 %v3200_v1 }
 0x160   :  { %v3438_v53 = vpop.f32.mrb[0].mxu1 }
 0x161   :  { %v3440_v19 = vpop.f32.mrb[1].mxu1 }
 0x162   :  { %v3442_v54 = vpop.f32.mrb[2].mxu1 }
 0x163   :  { %2562 = vmatmul.mubr.msk.bf16.gmra.mrb[32].mxu0 %vm937_vm0, %v308_v17  ;;  %v3445_v20 = vpop.f32.mrb[3].mxu1  ;;  %v3535_v17 = vsub.s32 0, %v3526_v2 }
 0x164   :  { %1582 = vmatprep.mubr.bf16.mxu0 %v3200_v1 }
 0x165   :  { %3759 = vst [vmem:[#allocation14_spill] sm:$0xff] %v3535_v17  ;;  %v3546_v49 = vrot.slane %v435_v45, %v3535_v17 }
 0x167   :  { %v1012_v5 = vadd.f32 %v3438_v53, %v3546_v49  ;;  %v1016_v22 = vadd.f32 %v3442_v54, %v3546_v49 }
 0x168   :  { %v3448_v57 = vpop.f32.mrb[4].mxu1 }
 0x169   :  { %v3450_v58 = vpop.f32.mrb[5].mxu1 }
 0x16a   :  { %v3452_v25 = vpop.f32.mrb[6].mxu1 }
 0x16b   :  { %2563 = vmatmul.mubr.msk.bf16.gmra.mrb[36].mxu0 %vm937_vm0, %v315_v18  ;;  %v3455_v60 = vpop.f32.mrb[7].mxu1 }
 0x16c   :  { %1592 = vmatprep.mubr.bf16.mxu0 %v3200_v1 }
 0x170   :  { %v3458_v6 = vpop.f32.mrb[8].mxu1 }
 0x171   :  { %v3460_v29 = vpop.f32.mrb[9].mxu1 }
 0x172   :  { %v3462_v7 = vpop.f32.mrb[10].mxu1 }
 0x173   :  { %2564 = vmatmul.mubr.msk.bf16.gmra.mrb[40].mxu0 %vm937_vm0, %v322_v52  ;;  %v3465_v32 = vpop.f32.mrb[11].mxu1  ;;  %v3551_v52 = vrot.slane %v435_v45, %v3541_v47 }
 0x174   :  { %1602 = vmatprep.mubr.bf16.mxu0 %v3200_v1 }
 0x175   :  { %v1014_v56 = vadd.f32 %v3440_v19, %v3551_v52  ;;  %v1018_v27 = vadd.f32 %v3445_v20, %v3551_v52  ;;  %v1022_v20 = vadd.f32 %v3448_v57, %v3546_v49 }
 0x178   :  { %v3467_v0 = vpop.f32.mrb[12].mxu1 }
 0x179   :  { %v3469_v14 = vpop.f32.mrb[13].mxu1 }
 0x17b   :  { %2565 = vmatmul.mubr.msk.bf16.gmra.mrb[44].mxu0 %vm937_vm0, %v329_v21 }
 0x17c   :  { %1612 = vmatprep.mubr.bf16.mxu0 %v3200_v1  ;;  %v3471_v1 = vpop.f32.mrb[14].mxu1 }
 0x17d   :  { %v3473_v34 = vpop.f32.mrb[15].mxu1 }
 0x180   :  { %v3475_v15 = vpop.f32.mrb[16].mxu1 }
 0x181   :  { %v3477_v16 = vpop.f32.mrb[17].mxu1 }
 0x182   :  { %v3479_v36 = vpop.f32.mrb[18].mxu1 }
 0x183   :  { %2566 = vmatmul.mubr.msk.bf16.gmra.mrb[48].mxu0 %vm937_vm0, %v336_v63  ;;  %v3481_v8 = vpop.f32.mrb[19].mxu1 }
 0x188   :  { %v3483_v23 = vpop.f32.mrb[20].mxu1 }
 0x189   :  { %v3485_v9 = vpop.f32.mrb[21].mxu1 }
 0x18a   :  { %v3487_v37 = vpop.f32.mrb[22].mxu1 }
 0x18b   :  { %v3489_v24 = vpop.f32.mrb[23].mxu1 }
 0x190   :  { %v3491_v39 = vpop.f32.mrb[24].mxu1 }
 0x191   :  { %v3493_v26 = vpop.f32.mrb[25].mxu1 }
 0x192   :  { %v3495_v28 = vpop.f32.mrb[26].mxu1 }
 0x193   :  { %v3497_v42 = vpop.f32.mrb[27].mxu1 }
 0x198   :  { %v3499_v30 = vpop.f32.mrb[28].mxu1 }
 0x199   :  { %v3501_v10 = vpop.f32.mrb[29].mxu1 }
 0x19a   :  { %v3503_v43 = vpop.f32.mrb[30].mxu1 }
 0x19b   :  { %v3505_v31 = vpop.f32.mrb[31].mxu1 }
 0x1c8   :  { %v3507_v33 = vpop.f32.mrb[32].mxu1 }
 0x1c9   :  { %v3509_v11 = vpop.f32.mrb[33].mxu1 }
 0x1ca   :  { %v3511_v35 = vpop.f32.mrb[34].mxu1 }
 0x1cb   :  { %v3513_v46 = vpop.f32.mrb[35].mxu1 }
 0x1d0   :  { %v3515_v38 = vpop.f32.mrb[36].mxu1 }
 0x1d1   :  { %v3517_v12 = vpop.f32.mrb[37].mxu1 }
 0x1d2   :  { %v3519_v40 = vpop.f32.mrb[38].mxu1 }
 0x1d3   :  { %v3521_v13 = vpop.f32.mrb[39].mxu1 }
 0x1d8   :  { %v3523_v41 = vpop.f32.mrb[40].mxu1 }
 0x1d9   :  { %v3528_v50 = vpop.f32.mrb[41].mxu1 }
 0x1da   :  { %v3530_v3 = vpop.f32.mrb[42].mxu1 }
 0x1db   :  { %v3532_v44 = vpop.f32.mrb[43].mxu1 }
 0x1e0   :  { %v3543_v18 = vpop.f32.mrb[44].mxu1 }
 0x1e1   :  { %3761 = vst [vmem:[#allocation16_spill] sm:$0xff] %v3543_v18  ;;  %v3548_v51 = vpop.f32.mrb[45].mxu1 }
 0x1e2   :  { %3762 = vst [vmem:[#allocation17_spill] sm:$0xff] %v3548_v51  ;;  %v3553_v4 = vpop.f32.mrb[46].mxu1  ;;  %v1028_v51 = vadd.f32 %v3455_v60, %v3551_v52 }
 0x1e3   :  { %3763 = vst [vmem:[#allocation18_spill] sm:$0xff] %v3553_v4  ;;  %v3555_v55 = vpop.f32.mrb[47].mxu1 }
 0x1e4   :  { %3764 = vst [vmem:[#allocation19_spill] sm:$0xff] %v3555_v55 }
 0x1e8   :  { %v3565_v45 = vpop.f32.mrb[48].mxu1 }
 0x1e9   :  { %3765 = vst [vmem:[#allocation20_spill] sm:$0xff] %v3565_v45  ;;  %v3567_v53 = vpop.f32.mrb[49].mxu1 }
 0x1ea   :  { %3766 = vst [vmem:[#allocation21_spill] sm:$0xff] %v3567_v53  ;;  %v1296_v55 = vpop.f32.mrb[50].mxu1 }
 0x1f6   :  { %v1494_v21 = vpop.f32.mrb[0].mxu0 }
 0x1f7   :  { %v2682_v59 = vadd.f32 %v1494_v21, %v1012_v5  ;;  %v1496_v61 = vpop.f32.mrb[1].mxu0  ;;  %v1297_v5 = vpop.f32.mrb[51].mxu1 }
 0x1f8   :  { %v2684_v62 = vadd.f32 %v1496_v61, %v1014_v56  ;;  %v1498_v63 = vpop.f32.mrb[2].mxu0 }
 0x1f9   :  { %v1671_v48 = vmul.f32 0.1, %v2682_v59  ;;  %v2686_v2 = vadd.f32 %v1498_v63, %v1016_v22  ;;  %v1500_v17 = vpop.f32.mrb[3].mxu0  ;;  %vm1621_vm1 = vcmp.gt.f32.partialorder %v2682_v59, 0.0  ;;  %v1024_v22 = vadd.f32 %v3450_v58, %v3551_v52 }
 0x1fa   :  { %v1672_v19 = vmul.f32 0.1, %v2684_v62  ;;  %v2688_v47 = vadd.f32 %v1500_v17, %v1018_v27  ;;  %vm1622_vm2 = vcmp.gt.f32.partialorder %v2684_v62, 0.0  ;;  %v1026_v17 = vadd.f32 %v3452_v25, %v3546_v49 }
 0x1fb   :  { %vm1623_vm3 = vcmp.gt.f32.partialorder %v2686_v2, 0.0  ;;  %v1673_v54 = vmul.f32 0.1, %v2686_v2  ;;  %v1721_v56 = vsel %vm1621_vm1, %v2682_v59, %v1671_v48 }
 0x1fc   :  { %vm1624_vm4 = vcmp.gt.f32.partialorder %v2688_v47, 0.0  ;;  %v1674_v21 = vmul.f32 0.1, %v2688_v47  ;;  %v1722_v45 = vsel %vm1622_vm2, %v2684_v62, %v1672_v19 }
 0x1fd   :  { %v1723_v61 = vsel %vm1623_vm3, %v2686_v2, %v1673_v54 }
 0x1fe   :  { %v1771_v63 = vpack.c.bf16 %v1723_v61, %v1721_v56  ;;  %v1504_v53 = vpop.f32.mrb[4].mxu0  ;;  %v1724_v4 = vsel %vm1624_vm4, %v2688_v47, %v1674_v21 }
 0x1ff   :  { %v2690_v55 = vadd.f32 %v1504_v53, %v1022_v20  ;;  %v1506_v27 = vpop.f32.mrb[5].mxu0  ;;  %v1772_v5 = vpack.c.bf16 %v1724_v4, %v1722_v45  ;;  %v1032_v4 = vadd.f32 %v3458_v6, %v3546_v49  ;;  %v1034_v45 = vadd.f32 %v3460_v29, %v3551_v52 }
 0x200   :  { %v2692_v18 = vadd.f32 %v1506_v27, %v1024_v22  ;;  %v1508_v57 = vpop.f32.mrb[6].mxu0 }
 0x201   :  { %v1675_v48 = vmul.f32 0.1, %v2690_v55  ;;  %v2694_v2 = vadd.f32 %v1508_v57, %v1026_v17  ;;  %v1510_v59 = vpop.f32.mrb[7].mxu0  ;;  %2033 = vmatprep.mubr.bf16.mxu1 %v1772_v5  ;;  %vm1625_vm5 = vcmp.gt.f32.partialorder %v2690_v55, 0.0 }
 0x202   :  { %v1676_v58 = vmul.f32 0.1, %v2692_v18  ;;  %v2696_v54 = vadd.f32 %v1510_v59, %v1028_v51  ;;  %2034 = vmatmul.mubr.bf16.vlgmr.msra.gmra.mrb[52].mxu1 %v1771_v63  ;;  %vm1626_vm6 = vcmp.gt.f32.partialorder %v2692_v18, 0.0  ;;  %v1036_v51 = vadd.f32 %v3462_v7, %v3546_v49 }
 0x203   :  { %vm1627_vm7 = vcmp.gt.f32.partialorder %v2694_v2, 0.0  ;;  %v1677_v47 = vmul.f32 0.1, %v2694_v2  ;;  %v1725_v62 = vsel %vm1625_vm5, %v2690_v55, %v1675_v48  ;;  %v1038_v63 = vadd.f32 %v3465_v32, %v3551_v52 }
 0x204   :  { %vm1628_vm8 = vcmp.gt.f32.partialorder %v2696_v54, 0.0  ;;  %v1678_v25 = vmul.f32 0.1, %v2696_v54  ;;  %v1726_v19 = vsel %vm1626_vm6, %v2692_v18, %v1676_v58  ;;  %v1042_v48 = vadd.f32 %v3467_v0, %v3546_v49 }
 0x205   :  { %v1727_v60 = vsel %vm1627_vm7, %v2694_v2, %v1677_v47  ;;  %v1044_v59 = vadd.f32 %v3469_v14, %v3551_v52 }
 0x206   :  { %v1514_v53 = vpop.f32.mrb[8].mxu0  ;;  %v1728_v21 = vsel %vm1628_vm8, %v2696_v54, %v1678_v25  ;;  %v1773_v20 = vpack.c.bf16 %v1727_v60, %v1725_v62 }
 0x207   :  { %v2698_v56 = vadd.f32 %v1514_v53, %v1032_v4  ;;  %v1516_v61 = vpop.f32.mrb[9].mxu0  ;;  %v1774_v22 = vpack.c.bf16 %v1728_v21, %v1726_v19  ;;  %v1046_v4 = vadd.f32 %v3471_v1, %v3546_v49  ;;  %v1048_v53 = vadd.f32 %v3473_v34, %v3551_v52 }
 0x208   :  { %v2700_v17 = vadd.f32 %v1516_v61, %v1034_v45  ;;  %v1518_v6 = vpop.f32.mrb[10].mxu0 }
 0x209   :  { %v1679_v55 = vmul.f32 0.1, %v2698_v56  ;;  %v2702_v27 = vadd.f32 %v1518_v6, %v1036_v51  ;;  %v1520_v5 = vpop.f32.mrb[11].mxu0  ;;  %2043 = vmatprep.mubr.bf16.mxu1 %v1774_v22  ;;  %vm1629_vm9 = vcmp.gt.f32.partialorder %v2698_v56, 0.0  ;;  %v1052_v22 = vadd.f32 %v3475_v15, %v3546_v49 }
 0x20a   :  { %v1680_v29 = vmul.f32 0.1, %v2700_v17  ;;  %v2704_v18 = vadd.f32 %v1520_v5, %v1038_v63  ;;  %2044 = vmatmul.mubr.bf16.gmra.mrb[56].mxu1 %v1773_v20  ;;  %vm1630_vm10 = vcmp.gt.f32.partialorder %v2700_v17, 0.0 }
 0x20b   :  { %vm1631_vm11 = vcmp.gt.f32.partialorder %v2702_v27, 0.0  ;;  %v1681_v57 = vmul.f32 0.1, %v2702_v27  ;;  %v1729_v2 = vsel %vm1629_vm9, %v2698_v56, %v1679_v55 }
 0x20c   :  { %vm1632_vm12 = vcmp.gt.f32.partialorder %v2704_v18, 0.0  ;;  %v1682_v7 = vmul.f32 0.1, %v2704_v18  ;;  %v1730_v54 = vsel %vm1630_vm10, %v2700_v17, %v1680_v29  ;;  %v1054_v17 = vadd.f32 %v3477_v16, %v3551_v52 }
 0x20d   :  { %v1731_v32 = vsel %vm1631_vm11, %v2702_v27, %v1681_v57  ;;  %v1056_v29 = vadd.f32 %v3479_v36, %v3546_v49 }
 0x20e   :  { %v1524_v58 = vpop.f32.mrb[12].mxu0  ;;  %v1732_v47 = vsel %vm1632_vm12, %v2704_v18, %v1682_v7  ;;  %v1775_v25 = vpack.c.bf16 %v1731_v32, %v1729_v2 }
 0x20f   :  { %v2706_v62 = vadd.f32 %v1524_v58, %v1042_v48  ;;  %v1526_v60 = vpop.f32.mrb[13].mxu0  ;;  %v1776_v45 = vpack.c.bf16 %v1732_v47, %v1730_v54  ;;  %v1058_v48 = vadd.f32 %v3481_v8, %v3551_v52 }
 0x210   :  { %v2708_v19 = vadd.f32 %v1526_v60, %v1044_v59  ;;  %v1528_v0 = vpop.f32.mrb[14].mxu0 }
 0x211   :  { %v1683_v21 = vmul.f32 0.1, %v2706_v62  ;;  %v2710_v20 = vadd.f32 %v1528_v0, %v1046_v4  ;;  %v1530_v51 = vpop.f32.mrb[15].mxu0  ;;  %2053 = vmatprep.mubr.bf16.mxu1 %v1776_v45  ;;  %vm1633_vm13 = vcmp.gt.f32.partialorder %v2706_v62, 0.0  ;;  %v1066_v0 = vadd.f32 %v3487_v37, %v3546_v49 }
 0x212   :  { %v1684_v14 = vmul.f32 0.1, %v2708_v19  ;;  %v2712_v56 = vadd.f32 %v1530_v51, %v1048_v53  ;;  %2054 = vmatmul.mubr.bf16.gmra.mrb[60].mxu1 %v1775_v25  ;;  %vm1634_vm14 = vcmp.gt.f32.partialorder %v2708_v19, 0.0  ;;  %v1062_v25 = vadd.f32 %v3483_v23, %v3546_v49 }
 0x213   :  { %vm1635_vm15 = vcmp.gt.f32.partialorder %v2710_v20, 0.0  ;;  %v1685_v61 = vmul.f32 0.1, %v2710_v20  ;;  %v1733_v63 = vsel %vm1633_vm13, %v2706_v62, %v1683_v21  ;;  %v1064_v62 = vadd.f32 %v3485_v9, %v3551_v52 }
 0x214   :  { %vm1636_vm0 = vcmp.gt.f32.partialorder %v2712_v56, 0.0  ;;  %v1686_v1 = vmul.f32 0.1, %v2712_v56  ;;  %v1734_v55 = vsel %vm1634_vm14, %v2708_v19, %v1684_v14  ;;  %v1068_v14 = vadd.f32 %v3489_v24, %v3551_v52 }
 0x215   :  { %v1735_v34 = vsel %vm1635_vm15, %v2710_v20, %v1685_v61 }
 0x216   :  { %v1534_v6 = vpop.f32.mrb[16].mxu0  ;;  %v1736_v27 = vsel %vm1636_vm0, %v2712_v56, %v1686_v1  ;;  %v1777_v5 = vpack.c.bf16 %v1735_v34, %v1733_v63 }
 0x217   :  { %v2714_v18 = vadd.f32 %v1534_v6, %v1052_v22  ;;  %v1536_v57 = vpop.f32.mrb[17].mxu0  ;;  %v1778_v7 = vpack.c.bf16 %v1736_v27, %v1734_v55  ;;  %v1074_v55 = vadd.f32 %v3493_v26, %v3551_v52 }
 0x218   :  { %v2716_v2 = vadd.f32 %v1536_v57, %v1054_v17  ;;  %v1538_v15 = vpop.f32.mrb[18].mxu0  ;;  %v1072_v17 = vadd.f32 %v3491_v39, %v3546_v49  ;;  %v1076_v57 = vadd.f32 %v3495_v28, %v3546_v49 }
 0x219   :  { %v1687_v32 = vmul.f32 0.1, %v2714_v18  ;;  %v2718_v59 = vadd.f32 %v1538_v15, %v1056_v29  ;;  %v1540_v58 = vpop.f32.mrb[19].mxu0  ;;  %2063 = vmatprep.mubr.bf16.mxu1 %v1778_v7  ;;  %vm1637_vm1 = vcmp.gt.f32.partialorder %v2714_v18, 0.0  ;;  %v1078_v15 = vadd.f32 %v3497_v42, %v3551_v52 }
 0x21a   :  { %v1688_v16 = vmul.f32 0.1, %v2716_v2  ;;  %v2720_v54 = vadd.f32 %v1540_v58, %v1058_v48  ;;  %2064 = vmatmul.mubr.bf16.gmra.mrb[64].mxu1 %v1777_v5  ;;  %vm1638_vm2 = vcmp.gt.f32.partialorder %v2716_v2, 0.0 }
 0x21b   :  { %vm1639_vm3 = vcmp.gt.f32.partialorder %v2718_v59, 0.0  ;;  %v1689_v47 = vmul.f32 0.1, %v2718_v59  ;;  %v1737_v4 = vsel %vm1637_vm1, %v2714_v18, %v1687_v32 }
 0x21c   :  { %vm1640_vm4 = vcmp.gt.f32.partialorder %v2720_v54, 0.0  ;;  %v1690_v36 = vmul.f32 0.1, %v2720_v54  ;;  %v1738_v45 = vsel %vm1638_vm2, %v2716_v2, %v1688_v16 }
 0x21d   :  { %v1739_v8 = vsel %vm1639_vm3, %v2718_v59, %v1689_v47 }
 0x21e   :  { %v1544_v60 = vpop.f32.mrb[20].mxu0  ;;  %v1740_v53 = vsel %vm1640_vm4, %v2720_v54, %v1690_v36  ;;  %v1779_v19 = vpack.c.bf16 %v1739_v8, %v1737_v4  ;;  %v1082_v36 = vadd.f32 %v3499_v30, %v3546_v49  ;;  %v1084_v4 = vadd.f32 %v3501_v10, %v3551_v52 }
 0x21f   :  { %v2722_v21 = vadd.f32 %v1544_v60, %v1062_v25  ;;  %v1546_v20 = vpop.f32.mrb[21].mxu0  ;;  %v1780_v51 = vpack.c.bf16 %v1740_v53, %v1738_v45  ;;  %v1086_v53 = vadd.f32 %v3503_v43, %v3546_v49 }
 0x220   :  { %v2724_v56 = vadd.f32 %v1546_v20, %v1064_v62  ;;  %v1548_v23 = vpop.f32.mrb[22].mxu0  ;;  %v1088_v20 = vadd.f32 %v3505_v31, %v3551_v52 }
 0x221   :  { %v1691_v61 = vmul.f32 0.1, %v2722_v21  ;;  %v2726_v1 = vadd.f32 %v1548_v23, %v1066_v0  ;;  %v1550_v22 = vpop.f32.mrb[23].mxu0  ;;  %2073 = vmatprep.mubr.bf16.mxu1 %v1780_v51  ;;  %vm1641_vm5 = vcmp.gt.f32.partialorder %v2722_v21, 0.0 }
 0x222   :  { %v1692_v9 = vmul.f32 0.1, %v2724_v56  ;;  %v2728_v63 = vadd.f32 %v1550_v22, %v1068_v14  ;;  %2074 = vmatmul.mubr.bf16.gmra.mrb[68].mxu1 %v1779_v19  ;;  %vm1642_vm6 = vcmp.gt.f32.partialorder %v2724_v56, 0.0  ;;  %v2745_v22 = vadd.f32 %v3507_v33, %v3546_v49 }
 0x223   :  { %vm1643_vm7 = vcmp.gt.f32.partialorder %v2726_v1, 0.0  ;;  %v1693_v34 = vmul.f32 0.1, %v2726_v1  ;;  %v1741_v6 = vsel %vm1641_vm5, %v2722_v21, %v1691_v61 }
 0x224   :  { %vm1644_vm8 = vcmp.gt.f32.partialorder %v2728_v63, 0.0  ;;  %v1694_v37 = vmul.f32 0.1, %v2728_v63  ;;  %v1742_v5 = vsel %vm1642_vm6, %v2724_v56, %v1692_v9 }
 0x225   :  { %v1743_v24 = vsel %vm1643_vm7, %v2726_v1, %v1693_v34 }
 0x226   :  { %v1554_v27 = vpop.f32.mrb[24].mxu0  ;;  %v1744_v29 = vsel %vm1644_vm8, %v2728_v63, %v1694_v37  ;;  %v1781_v18 = vpack.c.bf16 %v1743_v24, %v1741_v6  ;;  %v2747_v63 = vadd.f32 %v3509_v11, %v3551_v52  ;;  %v2749_v24 = vadd.f32 %v3511_v35, %v3546_v49 }
 0x227   :  { %v2730_v7 = vadd.f32 %v1554_v27, %v1072_v17  ;;  %v1556_v48 = vpop.f32.mrb[25].mxu0  ;;  %v1782_v2 = vpack.c.bf16 %v1744_v29, %v1742_v5  ;;  %v2751_v29 = vadd.f32 %v3513_v46, %v3551_v52 }
 0x228   :  { %v2732_v32 = vadd.f32 %v1556_v48, %v1074_v55  ;;  %v1558_v39 = vpop.f32.mrb[26].mxu0 }
 0x229   :  { %v1695_v59 = vmul.f32 0.1, %v2730_v7  ;;  %v2734_v58 = vadd.f32 %v1558_v39, %v1076_v57  ;;  %v1560_v16 = vpop.f32.mrb[27].mxu0  ;;  %2083 = vmatprep.mubr.bf16.mxu1 %v1782_v2  ;;  %vm1645_vm9 = vcmp.gt.f32.partialorder %v2730_v7, 0.0 }
 0x22a   :  { %v1696_v26 = vmul.f32 0.1, %v2732_v32  ;;  %v2736_v54 = vadd.f32 %v1560_v16, %v1078_v15  ;;  %2084 = vmatmul.mubr.bf16.gmra.mrb[72].mxu1 %v1781_v18  ;;  %vm1646_vm10 = vcmp.gt.f32.partialorder %v2732_v32, 0.0 }
 0x22b   :  { %vm1647_vm11 = vcmp.gt.f32.partialorder %v2734_v58, 0.0  ;;  %v1697_v47 = vmul.f32 0.1, %v2734_v58  ;;  %v1745_v25 = vsel %vm1645_vm9, %v2730_v7, %v1695_v59  ;;  %v2755_v59 = vadd.f32 %v3517_v12, %v3551_v52 }
 0x22c   :  { %vm1648_vm12 = vcmp.gt.f32.partialorder %v2736_v54, 0.0  ;;  %v1698_v28 = vmul.f32 0.1, %v2736_v54  ;;  %v1746_v62 = vsel %vm1646_vm10, %v2732_v32, %v1696_v26  ;;  %v2753_v32 = vadd.f32 %v3515_v38, %v3546_v49 }
 0x22d   :  { %v1747_v42 = vsel %vm1647_vm11, %v2734_v58, %v1697_v47  ;;  %v2757_v47 = vadd.f32 %v3519_v40, %v3546_v49 }
 0x22e   :  { %v1564_v8 = vpop.f32.mrb[28].mxu0  ;;  %v1748_v60 = vsel %vm1648_vm12, %v2736_v54, %v1698_v28  ;;  %v1783_v45 = vpack.c.bf16 %v1747_v42, %v1745_v25  ;;  %v2759_v42 = vadd.f32 %v3521_v13, %v3551_v52 }
 0x22f   :  { %v2738_v19 = vadd.f32 %v1564_v8, %v1082_v36  ;;  %v1566_v0 = vpop.f32.mrb[29].mxu0  ;;  %v1784_v21 = vpack.c.bf16 %v1748_v60, %v1746_v62 }
 0x230   :  { %v2740_v51 = vadd.f32 %v1566_v0, %v1084_v4  ;;  %v1568_v30 = vpop.f32.mrb[30].mxu0 }
 0x231   :  { %v1699_v14 = vmul.f32 0.1, %v2738_v19  ;;  %v2742_v56 = vadd.f32 %v1568_v30, %v1086_v53  ;;  %v1570_v23 = vpop.f32.mrb[31].mxu0  ;;  %2093 = vmatprep.mubr.bf16.mxu1 %v1784_v21  ;;  %vm1649_vm13 = vcmp.gt.f32.partialorder %v2738_v19, 0.0  ;;  %v2763_v21 = vadd.f32 %v3528_v50, %v3551_v52 }
 0x232   :  { %v1700_v10 = vmul.f32 0.1, %v2740_v51  ;;  %v2744_v61 = vadd.f32 %v1570_v23, %v1088_v20  ;;  %2094 = vmatmul.mubr.bf16.gmra.mrb[76].mxu1 %v1783_v45  ;;  %vm1650_vm14 = vcmp.gt.f32.partialorder %v2740_v51, 0.0 }
 0x233   :  { %vm1651_vm15 = vcmp.gt.f32.partialorder %v2742_v56, 0.0  ;;  %v1701_v1 = vmul.f32 0.1, %v2742_v56  ;;  %v1749_v9 = vsel %vm1649_vm13, %v2738_v19, %v1699_v14  ;;  %v2761_v19 = vadd.f32 %v3523_v41, %v3546_v49 }
 0x234   :  { %vm1652_vm0 = vcmp.gt.f32.partialorder %v2744_v61, 0.0  ;;  %v1702_v43 = vmul.f32 0.1, %v2744_v61  ;;  %v1750_v37 = vsel %vm1650_vm14, %v2740_v51, %v1700_v10 }
 0x235   :  { %v1751_v31 = vsel %vm1651_vm15, %v2742_v56, %v1701_v1  ;;  %v2765_v56 = vadd.f32 %v3530_v3, %v3546_v49  ;;  %v2767_v1 = vadd.f32 %v3532_v44, %v3551_v52 }
 0x236   :  { %v1574_v34 = vpop.f32.mrb[32].mxu0  ;;  %v1752_v17 = vsel %vm1652_vm0, %v2744_v61, %v1702_v43  ;;  %v1785_v6 = vpack.c.bf16 %v1751_v31, %v1749_v9 }
 0x237   :  { %v2746_v55 = vadd.f32 %v2745_v22, %v1574_v34  ;;  %v1576_v27 = vpop.f32.mrb[33].mxu0  ;;  %v1786_v5 = vpack.c.bf16 %v1752_v17, %v1750_v37  ;;  %v3767_v37 = vld [vmem:[#allocation16_spill] sm:$0xff] }
 0x238   :  { %v2748_v18 = vadd.f32 %v2747_v63, %v1576_v27  ;;  %v1578_v33 = vpop.f32.mrb[34].mxu0  ;;  %v2769_v17 = vadd.f32 %v3767_v37, %v3546_v49 }
 0x239   :  { %v1703_v57 = vmul.f32 0.1, %v2746_v55  ;;  %v2750_v7 = vadd.f32 %v2749_v24, %v1578_v33  ;;  %v1580_v48 = vpop.f32.mrb[35].mxu0  ;;  %2103 = vmatprep.mubr.bf16.mxu1 %v1786_v5  ;;  %vm1653_vm1 = vcmp.gt.f32.partialorder %v2746_v55, 0.0  ;;  %v3768_v24 = vld [vmem:[#allocation17_spill] sm:$0xff]  ;;  %v3769_v33 = vld [vmem:[#allocation18_spill] sm:$0xff] }
 0x23a   :  { %v1704_v11 = vmul.f32 0.1, %v2748_v18  ;;  %v2752_v2 = vadd.f32 %v2751_v29, %v1580_v48  ;;  %2104 = vmatmul.mubr.bf16.gmra.mrb[80].mxu1 %v1785_v6  ;;  %vm1654_vm2 = vcmp.gt.f32.partialorder %v2748_v18, 0.0 }
 0x23b   :  { %vm1655_vm3 = vcmp.gt.f32.partialorder %v2750_v7, 0.0  ;;  %v1705_v15 = vmul.f32 0.1, %v2750_v7  ;;  %v1753_v39 = vsel %vm1653_vm1, %v2746_v55, %v1703_v57  ;;  %v2771_v55 = vadd.f32 %v3768_v24, %v3551_v52 }
 0x23c   :  { %vm1656_vm4 = vcmp.gt.f32.partialorder %v2752_v2, 0.0  ;;  %v1706_v35 = vmul.f32 0.1, %v2752_v2  ;;  %v1754_v16 = vsel %vm1654_vm2, %v2748_v18, %v1704_v11  ;;  %v2773_v57 = vadd.f32 %v3769_v33, %v3546_v49 }
 0x23d   :  { %v1755_v46 = vsel %vm1655_vm3, %v2750_v7, %v1705_v15 }
 0x23e   :  { %v1584_v58 = vpop.f32.mrb[36].mxu0  ;;  %v1756_v26 = vsel %vm1656_vm4, %v2752_v2, %v1706_v35  ;;  %v1787_v54 = vpack.c.bf16 %v1755_v46, %v1753_v39  ;;  %v3770_v2 = vld [vmem:[#allocation19_spill] sm:$0xff] }
 0x23f   :  { %v2754_v28 = vadd.f32 %v2753_v32, %v1584_v58  ;;  %v1586_v36 = vpop.f32.mrb[37].mxu0  ;;  %v1788_v25 = vpack.c.bf16 %v1756_v26, %v1754_v16  ;;  %v2775_v15 = vadd.f32 %v3770_v2, %v3551_v52 }
 0x240   :  { %v2756_v4 = vadd.f32 %v2755_v59, %v1586_v36  ;;  %v1588_v38 = vpop.f32.mrb[38].mxu0 }
 0x241   :  { %v1707_v8 = vmul.f32 0.1, %v2754_v28  ;;  %v2758_v62 = vadd.f32 %v2757_v47, %v1588_v38  ;;  %v1590_v60 = vpop.f32.mrb[39].mxu0  ;;  %2113 = vmatprep.mubr.bf16.mxu1 %v1788_v25  ;;  %vm1657_vm5 = vcmp.gt.f32.partialorder %v2754_v28, 0.0  ;;  %v3771_v47 = vld [vmem:[#allocation20_spill] sm:$0xff] }
 0x242   :  { %v1708_v12 = vmul.f32 0.1, %v2756_v4  ;;  %v2760_v45 = vadd.f32 %v2759_v42, %v1590_v60  ;;  %2114 = vmatmul.mubr.bf16.gmra.mrb[84].mxu1 %v1787_v54  ;;  %vm1658_vm6 = vcmp.gt.f32.partialorder %v2756_v4, 0.0  ;;  %v3772_v42 = vld [vmem:[#allocation21_spill] sm:$0xff] }
 0x243   :  { %vm1659_vm7 = vcmp.gt.f32.partialorder %v2758_v62, 0.0  ;;  %v1709_v53 = vmul.f32 0.1, %v2758_v62  ;;  %v1757_v0 = vsel %vm1657_vm5, %v2754_v28, %v1707_v8  ;;  %v2777_v28 = vadd.f32 %v3771_v47, %v3546_v49 }
 0x244   :  { %vm1660_vm8 = vcmp.gt.f32.partialorder %v2760_v45, 0.0  ;;  %v1710_v40 = vmul.f32 0.1, %v2760_v45  ;;  %v1758_v51 = vsel %vm1658_vm6, %v2756_v4, %v1708_v12  ;;  %v2779_v4 = vadd.f32 %v3772_v42, %v3551_v52 }
 0x245   :  { %v1759_v13 = vsel %vm1659_vm7, %v2758_v62, %v1709_v53 }
 0x246   :  { %v1594_v20 = vpop.f32.mrb[40].mxu0  ;;  %v1760_v30 = vsel %vm1660_vm8, %v2760_v45, %v1710_v40  ;;  %v1789_v14 = vpack.c.bf16 %v1759_v13, %v1757_v0 }
 0x247   :  { %v2762_v23 = vadd.f32 %v2761_v19, %v1594_v20  ;;  %v1596_v10 = vpop.f32.mrb[41].mxu0  ;;  %v1790_v61 = vpack.c.bf16 %v1760_v30, %v1758_v51  ;;  %v3664_v30 = vld [vmem:[%s3749_s5] sm:$0x3] }
 0x248   :  { %v2764_v43 = vadd.f32 %v2763_v21, %v1596_v10  ;;  %v1598_v41 = vpop.f32.mrb[42].mxu0  ;;  %v1829_v10 = vld [vmem:[%s3748_s4] sm:$0x3]  ;;  %s3202_s4 = smov [#allocation9]  }
 0x249   :  { %v1711_v22 = vmul.f32 0.1, %v2762_v23  ;;  %v2766_v9 = vadd.f32 %v2765_v56, %v1598_v41  ;;  %v1600_v31 = vpop.f32.mrb[43].mxu0  ;;  %2123 = vmatprep.mubr.bf16.mxu1 %v1790_v61  ;;  %vm1661_vm9 = vcmp.gt.f32.partialorder %v2762_v23, 0.0  ;;  %v3774_v61 = vld [vmem:[#allocation14_spill] sm:$0xff]  ;;  %s2446_s5 = sshll.u32 %s3202_s4, 4  ;;  %s2447_s5 = int_to_ptr.vmem [resolvable:$true] %s2446_s5 }
 0x24a   :  { %v1712_v50 = vmul.f32 0.1, %v2764_v43  ;;  %v2768_v63 = vadd.f32 %v2767_v1, %v1600_v31  ;;  %2124 = vmatmul.mubr.bf16.gmra.mrb[88].mxu1 %v1789_v14  ;;  %vm1662_vm10 = vcmp.gt.f32.partialorder %v2764_v43, 0.0  ;;  %v3773_v14 = vld [vmem:[#allocation15_spill] sm:$0xff]  ;;  %v3672_v1 = vrot.slane %v1829_v10, %v3774_v61  ;;  %s3165_s20 = scalar_lea.vmem %s2447_s5, 32  ;;  %p3170_p11 = scmp.lt.s32.totalorder %s2447_s5, %s2447_s5 }
 0x24b   :  { %vm1663_vm11 = vcmp.gt.f32.partialorder %v2766_v9, 0.0  ;;  %v1713_v34 = vmul.f32 0.1, %v2766_v9  ;;  %v1761_v6 = vsel %vm1661_vm9, %v2762_v23, %v1711_v22  ;;  %v2331_v56 = vrot.slane %v3664_v30, %v3773_v14  ;;  %v2313_v23 = vld [vmem:[#allocation2] sm:$0x1]  ;;  %p3166_p10 = scmp.ne.s32.totalorder %s2447_s5, %s3165_s20  ;;  %p3171_p12 = scmp.lt.s32.totalorder %s3165_s20, %s3165_s20 }
 0x24c   :  { %vm1664_vm12 = vcmp.gt.f32.partialorder %v2768_v63, 0.0  ;;  %v1714_v3 = vmul.f32 0.1, %v2768_v63  ;;  %v1762_v5 = vsel %vm1662_vm10, %v2764_v43, %v1712_v50  ;;  %2316 = vperm.xlu0 %2895, %v2313_v23   ;;  %v3675_v43 = vrot.slane %v1829_v10, %v3773_v14 }
 0x24d   :  { %v1763_v44 = vsel %vm1663_vm11, %v2766_v9, %v1713_v34  ;;  %p3172_p13 = por %p3171_p12, %p3170_p11 }
 0x24e   :  { %v1604_v27 = vpop.f32.mrb[44].mxu0  ;;  %v1764_v29 = vsel %vm1664_vm12, %v2768_v63, %v1714_v3  ;;  %v1791_v18 = vpack.c.bf16 %v1763_v44, %v1761_v6 }
 0x24f   :  { %v2770_v7 = vadd.f32 %v2769_v17, %v1604_v27  ;;  %v1606_v48 = vpop.f32.mrb[45].mxu0  ;;  %v1792_v11 = vpack.c.bf16 %v1764_v29, %v1762_v5  ;;  %p3173_p0 = pnand %p3172_p13, %p3166_p10 }
 0x250   :  { %v2772_v35 = vadd.f32 %v2771_v55, %v1606_v48  ;;  %v1608_v32 = vpop.f32.mrb[46].mxu0 }
 0x251   :  { %v1715_v39 = vmul.f32 0.1, %v2770_v7  ;;  %v2774_v46 = vadd.f32 %v2773_v57, %v1608_v32  ;;  %v1610_v59 = vpop.f32.mrb[47].mxu0  ;;  %2133 = vmatprep.mubr.bf16.mxu1 %v1792_v11  ;;  %vm1665_vm13 = vcmp.gt.f32.partialorder %v2770_v7, 0.0 }
 0x252   :  { %v1716_v58 = vmul.f32 0.1, %v2772_v35  ;;  %v2776_v16 = vadd.f32 %v2775_v15, %v1610_v59  ;;  %2134 = vmatmul.mubr.bf16.gmra.mrb[92].mxu1 %v1791_v18  ;;  %vm1666_vm14 = vcmp.gt.f32.partialorder %v2772_v35, 0.0 }
 0x253   :  { %vm1667_vm15 = vcmp.gt.f32.partialorder %v2774_v46, 0.0  ;;  %v1717_v26 = vmul.f32 0.1, %v2774_v46  ;;  %v1765_v36 = vsel %vm1665_vm13, %v2770_v7, %v1715_v39 }
 0x254   :  { %vm1668_vm0 = vcmp.gt.f32.partialorder %v2776_v16, 0.0  ;;  %v1718_v54 = vmul.f32 0.1, %v2776_v16  ;;  %v1766_v8 = vsel %vm1666_vm14, %v2772_v35, %v1716_v58 }
 0x255   :  { %v1767_v25 = vsel %vm1667_vm15, %v2774_v46, %v1717_v26 }
 0x256   :  { %v1614_v38 = vpop.f32.mrb[48].mxu0  ;;  %v1768_v62 = vsel %vm1668_vm0, %v2776_v16, %v1718_v54  ;;  %v1793_v60 = vpack.c.bf16 %v1767_v25, %v1765_v36 }
 0x257   :  { %v2778_v12 = vadd.f32 %v2777_v28, %v1614_v38  ;;  %v1616_v45 = vpop.f32.mrb[49].mxu0  ;;  %v1794_v53 = vpack.c.bf16 %v1768_v62, %v1766_v8 }
 0x258   :  { %v2780_v40 = vadd.f32 %v2779_v4, %v1616_v45  ;;  %v1618_v19 = vpop.f32.mrb[50].mxu0 }
 0x259   :  { %v1719_v0 = vmul.f32 0.1, %v2778_v12  ;;  %v1619_v13 = vpop.f32.mrb[51].mxu0  ;;  %2143 = vmatprep.mubr.bf16.mxu1 %v1794_v53  ;;  %vm1669_vm1 = vcmp.gt.f32.partialorder %v2778_v12, 0.0 }
 0x25a   :  { %vm1670_vm2 = vcmp.gt.f32.partialorder %v2780_v40, 0.0  ;;  %v1720_v49 = vmul.f32 0.1, %v2780_v40  ;;  %2144 = vmatmul.mubr.bf16.gmra.mrb[96].mxu1 %v1793_v60 }
 0x25b   :  { %v1769_v51 = vsel %vm1669_vm1, %v2778_v12, %v1719_v0 }
 0x25c   :  { %v1770_v21 = vsel %vm1670_vm2, %v2780_v40, %v1720_v49  ;;  %v1795_v52 = vpack.c.bf16 %v1769_v51, %v1769_v51 }
 0x25d   :  { %v1796_v20 = vpack.c.bf16 %v1770_v21, %v1770_v21 }
 0x25f   :  { %2153 = vmatprep.mubr.bf16.mxu1 %v1796_v20 }
 0x262   :  { %2154 = vmatmul.mubr.bf16.gmra.mrb[100].mxu1 %v1795_v52 }
 0x263   :  { %2398 = vmatprep.mubr.f32.mxu1 %v2331_v56 }
 0x2d5   :  { %v2035_v41 = vpop.f32.mrb[52].mxu1 }
 0x2d6   :  { %v2036_v22 = vadd.f32 %v2035_v41, %v3672_v1  ;;  %v2037_v9 = vpop.f32.mrb[53].mxu1 }
 0x2d7   :  { %v2038_v31 = vadd.f32 %v2037_v9, %v3675_v43  ;;  %v2039_v50 = vpop.f32.mrb[54].mxu1 }
 0x2d8   :  { %v2212_v63 = vmul.f32 0.1, %v2036_v22  ;;  %v2040_v34 = vadd.f32 %v2039_v50, %v3672_v1  ;;  %v2041_v3 = vpop.f32.mrb[55].mxu1  ;;  %vm2162_vm3 = vcmp.gt.f32.partialorder %v2036_v22, 0.0 }
 0x2d9   :  { %v2213_v37 = vmul.f32 0.1, %v2038_v31  ;;  %v2042_v17 = vadd.f32 %v2041_v3, %v3675_v43  ;;  %vm2163_vm4 = vcmp.gt.f32.partialorder %v2038_v31, 0.0 }
 0x2da   :  { %vm2164_vm5 = vcmp.gt.f32.partialorder %v2040_v34, 0.0  ;;  %v2214_v6 = vmul.f32 0.1, %v2040_v34  ;;  %v2262_v24 = vsel %vm2162_vm3, %v2036_v22, %v2212_v63 }
 0x2db   :  { %vm2165_vm6 = vcmp.gt.f32.partialorder %v2042_v17, 0.0  ;;  %v2215_v44 = vmul.f32 0.1, %v2042_v17  ;;  %v2263_v29 = vsel %vm2163_vm4, %v2038_v31, %v2213_v37 }
 0x2dc   :  { %v2264_v55 = vsel %vm2164_vm5, %v2040_v34, %v2214_v6 }
 0x2dd   :  { %v2603_v27 = vpack.c.bf16 %v2264_v55, %v2262_v24  ;;  %v2045_v5 = vpop.f32.mrb[56].mxu1  ;;  %v2265_v18 = vsel %vm2165_vm6, %v2042_v17, %v2215_v44 }
 0x2de   :  { %v2046_v33 = vadd.f32 %v2045_v5, %v3672_v1  ;;  %v2047_v57 = vpop.f32.mrb[57].mxu1  ;;  %v2601_v7 = vpack.c.bf16 %v2265_v18, %v2263_v29 }
 0x2df   :  { %v2048_v48 = vadd.f32 %v2047_v57, %v3675_v43  ;;  %v2049_v11 = vpop.f32.mrb[58].mxu1 }
 0x2e0   :  { %v2216_v2 = vmul.f32 0.1, %v2046_v33  ;;  %v2050_v15 = vadd.f32 %v2049_v11, %v3672_v1  ;;  %v2051_v35 = vpop.f32.mrb[59].mxu1  ;;  %2602 = vmatprep.subr.bf16.mxu1 %v2601_v7  ;;  %vm2166_vm7 = vcmp.gt.f32.partialorder %v2046_v33, 0.0 }
 0x2e1   :  { %v2217_v32 = vmul.f32 0.1, %v2048_v48  ;;  %v2052_v39 = vadd.f32 %v2051_v35, %v3675_v43  ;;  %2604 = vmatpush1.bf16.xpose.msra.mxu1 %v2603_v27  ;;  %vm2167_vm8 = vcmp.gt.f32.partialorder %v2048_v48, 0.0 }
 0x2e2   :  { %vm2168_vm9 = vcmp.gt.f32.partialorder %v2050_v15, 0.0  ;;  %v2218_v46 = vmul.f32 0.1, %v2050_v15  ;;  %v2266_v58 = vsel %vm2166_vm7, %v2046_v33, %v2216_v2 }
 0x2e3   :  { %vm2169_vm10 = vcmp.gt.f32.partialorder %v2052_v39, 0.0  ;;  %v2219_v59 = vmul.f32 0.1, %v2052_v39  ;;  %v2267_v47 = vsel %vm2167_vm8, %v2048_v48, %v2217_v32 }
 0x2e4   :  { %v2268_v16 = vsel %vm2168_vm9, %v2050_v15, %v2218_v46 }
 0x2e5   :  { %v2607_v26 = vpack.c.bf16 %v2268_v16, %v2266_v58  ;;  %v2055_v54 = vpop.f32.mrb[60].mxu1  ;;  %v2269_v28 = vsel %vm2169_vm10, %v2052_v39, %v2219_v59 }
 0x2e6   :  { %v2056_v36 = vadd.f32 %v2055_v54, %v3672_v1  ;;  %v2057_v25 = vpop.f32.mrb[61].mxu1  ;;  %v2605_v42 = vpack.c.bf16 %v2269_v28, %v2267_v47 }
 0x2e7   :  { %v2058_v4 = vadd.f32 %v2057_v25, %v3675_v43  ;;  %v2059_v38 = vpop.f32.mrb[62].mxu1 }
 0x2e8   :  { %v2220_v8 = vmul.f32 0.1, %v2056_v36  ;;  %v2060_v62 = vadd.f32 %v2059_v38, %v3672_v1  ;;  %v2061_v60 = vpop.f32.mrb[63].mxu1  ;;  %2606 = vmatprep.subr.bf16.mxu1 %v2605_v42  ;;  %vm2170_vm11 = vcmp.gt.f32.partialorder %v2056_v36, 0.0 }
 0x2e9   :  { %v2221_v12 = vmul.f32 0.1, %v2058_v4  ;;  %v2062_v45 = vadd.f32 %v2061_v60, %v3675_v43  ;;  %2608 = vmatpush1.bf16.xpose.msra.mxu1 %v2607_v26  ;;  %vm2171_vm12 = vcmp.gt.f32.partialorder %v2058_v4, 0.0 }
 0x2ea   :  { %vm2172_vm13 = vcmp.gt.f32.partialorder %v2060_v62, 0.0  ;;  %v2222_v53 = vmul.f32 0.1, %v2060_v62  ;;  %v2270_v19 = vsel %vm2170_vm11, %v2056_v36, %v2220_v8 }
 0x2eb   :  { %vm2173_vm14 = vcmp.gt.f32.partialorder %v2062_v45, 0.0  ;;  %v2223_v40 = vmul.f32 0.1, %v2062_v45  ;;  %v2271_v21 = vsel %vm2171_vm12, %v2058_v4, %v2221_v12 }
 0x2ec   :  { %v2272_v0 = vsel %vm2172_vm13, %v2060_v62, %v2222_v53 }
 0x2ed   :  { %v2611_v13 = vpack.c.bf16 %v2272_v0, %v2270_v19  ;;  %v2065_v49 = vpop.f32.mrb[64].mxu1  ;;  %v2273_v20 = vsel %vm2173_vm14, %v2062_v45, %v2223_v40 }
 0x2ee   :  { %v2066_v51 = vadd.f32 %v2065_v49, %v3672_v1  ;;  %v2067_v52 = vpop.f32.mrb[65].mxu1  ;;  %v2609_v14 = vpack.c.bf16 %v2273_v20, %v2271_v21 }
 0x2ef   :  { %v2068_v56 = vadd.f32 %v2067_v52, %v3675_v43  ;;  %v2069_v23 = vpop.f32.mrb[66].mxu1 }
 0x2f0   :  { %v2224_v10 = vmul.f32 0.1, %v2066_v51  ;;  %v2070_v41 = vadd.f32 %v2069_v23, %v3672_v1  ;;  %v2071_v22 = vpop.f32.mrb[67].mxu1  ;;  %2610 = vmatprep.subr.bf16.mxu1 %v2609_v14  ;;  %vm2174_vm15 = vcmp.gt.f32.partialorder %v2066_v51, 0.0 }
 0x2f1   :  { %v2225_v9 = vmul.f32 0.1, %v2068_v56  ;;  %v2072_v31 = vadd.f32 %v2071_v22, %v3675_v43  ;;  %2612 = vmatpush1.bf16.xpose.msra.mxu1 %v2611_v13  ;;  %vm2175_vm0 = vcmp.gt.f32.partialorder %v2068_v56, 0.0 }
 0x2f2   :  { %vm2176_vm1 = vcmp.gt.f32.partialorder %v2070_v41, 0.0  ;;  %v2226_v50 = vmul.f32 0.1, %v2070_v41  ;;  %v2274_v34 = vsel %vm2174_vm15, %v2066_v51, %v2224_v10 }
 0x2f3   :  { %vm2177_vm2 = vcmp.gt.f32.partialorder %v2072_v31, 0.0  ;;  %v2227_v63 = vmul.f32 0.1, %v2072_v31  ;;  %v2275_v6 = vsel %vm2175_vm0, %v2068_v56, %v2225_v9 }
 0x2f4   :  { %v2276_v3 = vsel %vm2176_vm1, %v2070_v41, %v2226_v50 }
 0x2f5   :  { %v2615_v37 = vpack.c.bf16 %v2276_v3, %v2274_v34  ;;  %v2075_v17 = vpop.f32.mrb[68].mxu1  ;;  %v2277_v44 = vsel %vm2177_vm2, %v2072_v31, %v2227_v63 }
 0x2f6   :  { %v2076_v24 = vadd.f32 %v2075_v17, %v3672_v1  ;;  %v2077_v55 = vpop.f32.mrb[69].mxu1  ;;  %v2613_v27 = vpack.c.bf16 %v2277_v44, %v2275_v6 }
 0x2f7   :  { %v2078_v5 = vadd.f32 %v2077_v55, %v3675_v43  ;;  %v2079_v29 = vpop.f32.mrb[70].mxu1 }
 0x2f8   :  { %v2228_v18 = vmul.f32 0.1, %v2076_v24  ;;  %v2080_v33 = vadd.f32 %v2079_v29, %v3672_v1  ;;  %v2081_v57 = vpop.f32.mrb[71].mxu1  ;;  %2614 = vmatprep.subr.bf16.mxu1 %v2613_v27  ;;  %vm2178_vm3 = vcmp.gt.f32.partialorder %v2076_v24, 0.0 }
 0x2f9   :  { %v2229_v7 = vmul.f32 0.1, %v2078_v5  ;;  %v2082_v48 = vadd.f32 %v2081_v57, %v3675_v43  ;;  %2616 = vmatpush1.bf16.xpose.msra.mxu1 %v2615_v37  ;;  %vm2179_vm4 = vcmp.gt.f32.partialorder %v2078_v5, 0.0 }
 0x2fa   :  { %vm2180_vm5 = vcmp.gt.f32.partialorder %v2080_v33, 0.0  ;;  %v2230_v11 = vmul.f32 0.1, %v2080_v33  ;;  %v2278_v15 = vsel %vm2178_vm3, %v2076_v24, %v2228_v18 }
 0x2fb   :  { %vm2181_vm6 = vcmp.gt.f32.partialorder %v2082_v48, 0.0  ;;  %v2231_v2 = vmul.f32 0.1, %v2082_v48  ;;  %v2279_v46 = vsel %vm2179_vm4, %v2078_v5, %v2229_v7 }
 0x2fc   :  { %v2280_v35 = vsel %vm2180_vm5, %v2080_v33, %v2230_v11 }
 0x2fd   :  { %v2619_v32 = vpack.c.bf16 %v2280_v35, %v2278_v15  ;;  %v2085_v39 = vpop.f32.mrb[72].mxu1  ;;  %v2281_v59 = vsel %vm2181_vm6, %v2082_v48, %v2231_v2 }
 0x2fe   :  { %v2086_v58 = vadd.f32 %v2085_v39, %v3672_v1  ;;  %v2087_v16 = vpop.f32.mrb[73].mxu1  ;;  %v2617_v26 = vpack.c.bf16 %v2281_v59, %v2279_v46 }
 0x2ff   :  { %v2088_v54 = vadd.f32 %v2087_v16, %v3675_v43  ;;  %v2089_v47 = vpop.f32.mrb[74].mxu1 }
 0x300   :  { %v2232_v28 = vmul.f32 0.1, %v2086_v58  ;;  %v2090_v36 = vadd.f32 %v2089_v47, %v3672_v1  ;;  %v2091_v25 = vpop.f32.mrb[75].mxu1  ;;  %2618 = vmatprep.subr.bf16.mxu1 %v2617_v26  ;;  %vm2182_vm7 = vcmp.gt.f32.partialorder %v2086_v58, 0.0 }
 0x301   :  { %v2233_v42 = vmul.f32 0.1, %v2088_v54  ;;  %v2092_v4 = vadd.f32 %v2091_v25, %v3675_v43  ;;  %2620 = vmatpush1.bf16.xpose.msra.mxu1 %v2619_v32  ;;  %vm2183_vm8 = vcmp.gt.f32.partialorder %v2088_v54, 0.0 }
 0x302   :  { %vm2184_vm9 = vcmp.gt.f32.partialorder %v2090_v36, 0.0  ;;  %v2234_v38 = vmul.f32 0.1, %v2090_v36  ;;  %v2282_v62 = vsel %vm2182_vm7, %v2086_v58, %v2232_v28 }
 0x303   :  { %vm2185_vm10 = vcmp.gt.f32.partialorder %v2092_v4, 0.0  ;;  %v2235_v8 = vmul.f32 0.1, %v2092_v4  ;;  %v2283_v53 = vsel %vm2183_vm8, %v2088_v54, %v2233_v42 }
 0x304   :  { %v2284_v60 = vsel %vm2184_vm9, %v2090_v36, %v2234_v38 }
 0x305   :  { %v2623_v12 = vpack.c.bf16 %v2284_v60, %v2282_v62  ;;  %v2095_v45 = vpop.f32.mrb[76].mxu1  ;;  %v2285_v40 = vsel %vm2185_vm10, %v2092_v4, %v2235_v8 }
 0x306   :  { %v2096_v19 = vadd.f32 %v2095_v45, %v3672_v1  ;;  %v2097_v0 = vpop.f32.mrb[77].mxu1  ;;  %v2621_v13 = vpack.c.bf16 %v2285_v40, %v2283_v53 }
 0x307   :  { %v2098_v49 = vadd.f32 %v2097_v0, %v3675_v43  ;;  %v2099_v21 = vpop.f32.mrb[78].mxu1 }
 0x308   :  { %v2236_v20 = vmul.f32 0.1, %v2096_v19  ;;  %v2100_v51 = vadd.f32 %v2099_v21, %v3672_v1  ;;  %v2101_v52 = vpop.f32.mrb[79].mxu1  ;;  %2622 = vmatprep.subr.bf16.mxu1 %v2621_v13  ;;  %vm2186_vm11 = vcmp.gt.f32.partialorder %v2096_v19, 0.0 }
 0x309   :  { %v2237_v14 = vmul.f32 0.1, %v2098_v49  ;;  %v2102_v56 = vadd.f32 %v2101_v52, %v3675_v43  ;;  %2624 = vmatpush1.bf16.xpose.msra.mxu1 %v2623_v12  ;;  %vm2187_vm12 = vcmp.gt.f32.partialorder %v2098_v49, 0.0 }
 0x30a   :  { %vm2188_vm13 = vcmp.gt.f32.partialorder %v2100_v51, 0.0  ;;  %v2238_v23 = vmul.f32 0.1, %v2100_v51  ;;  %v2286_v41 = vsel %vm2186_vm11, %v2096_v19, %v2236_v20 }
 0x30b   :  { %vm2189_vm14 = vcmp.gt.f32.partialorder %v2102_v56, 0.0  ;;  %v2239_v10 = vmul.f32 0.1, %v2102_v56  ;;  %v2287_v50 = vsel %vm2187_vm12, %v2098_v49, %v2237_v14 }
 0x30c   :  { %v2288_v22 = vsel %vm2188_vm13, %v2100_v51, %v2238_v23 }
 0x30d   :  { %v2627_v9 = vpack.c.bf16 %v2288_v22, %v2286_v41  ;;  %v2105_v31 = vpop.f32.mrb[80].mxu1  ;;  %v2289_v63 = vsel %vm2189_vm14, %v2102_v56, %v2239_v10 }
 0x30e   :  { %v2106_v34 = vadd.f32 %v2105_v31, %v3672_v1  ;;  %v2107_v3 = vpop.f32.mrb[81].mxu1  ;;  %v2625_v37 = vpack.c.bf16 %v2289_v63, %v2287_v50 }
 0x30f   :  { %v2108_v17 = vadd.f32 %v2107_v3, %v3675_v43  ;;  %v2109_v6 = vpop.f32.mrb[82].mxu1 }
 0x310   :  { %v2240_v44 = vmul.f32 0.1, %v2106_v34  ;;  %v2110_v24 = vadd.f32 %v2109_v6, %v3672_v1  ;;  %v2111_v55 = vpop.f32.mrb[83].mxu1  ;;  %2626 = vmatprep.subr.bf16.mxu1 %v2625_v37  ;;  %vm2190_vm15 = vcmp.gt.f32.partialorder %v2106_v34, 0.0 }
 0x311   :  { %v2241_v27 = vmul.f32 0.1, %v2108_v17  ;;  %v2112_v5 = vadd.f32 %v2111_v55, %v3675_v43  ;;  %2628 = vmatpush1.bf16.xpose.msra.mxu1 %v2627_v9  ;;  %vm2191_vm0 = vcmp.gt.f32.partialorder %v2108_v17, 0.0 }
 0x312   :  { %vm2192_vm1 = vcmp.gt.f32.partialorder %v2110_v24, 0.0  ;;  %v2242_v29 = vmul.f32 0.1, %v2110_v24  ;;  %v2290_v33 = vsel %vm2190_vm15, %v2106_v34, %v2240_v44 }
 0x313   :  { %vm2193_vm2 = vcmp.gt.f32.partialorder %v2112_v5, 0.0  ;;  %v2243_v18 = vmul.f32 0.1, %v2112_v5  ;;  %v2291_v11 = vsel %vm2191_vm0, %v2108_v17, %v2241_v27 }
 0x314   :  { %v2292_v57 = vsel %vm2192_vm1, %v2110_v24, %v2242_v29 }
 0x315   :  { %v2631_v7 = vpack.c.bf16 %v2292_v57, %v2290_v33  ;;  %v2115_v48 = vpop.f32.mrb[84].mxu1  ;;  %v2293_v2 = vsel %vm2193_vm2, %v2112_v5, %v2243_v18 }
 0x316   :  { %v2116_v15 = vadd.f32 %v2115_v48, %v3672_v1  ;;  %v2117_v35 = vpop.f32.mrb[85].mxu1  ;;  %v2629_v32 = vpack.c.bf16 %v2293_v2, %v2291_v11 }
 0x317   :  { %v2118_v39 = vadd.f32 %v2117_v35, %v3675_v43  ;;  %v2119_v46 = vpop.f32.mrb[86].mxu1 }
 0x318   :  { %v2244_v59 = vmul.f32 0.1, %v2116_v15  ;;  %v2120_v58 = vadd.f32 %v2119_v46, %v3672_v1  ;;  %v2121_v16 = vpop.f32.mrb[87].mxu1  ;;  %2630 = vmatprep.subr.bf16.mxu1 %v2629_v32  ;;  %vm2194_vm3 = vcmp.gt.f32.partialorder %v2116_v15, 0.0 }
 0x319   :  { %v2245_v26 = vmul.f32 0.1, %v2118_v39  ;;  %v2122_v54 = vadd.f32 %v2121_v16, %v3675_v43  ;;  %2632 = vmatpush1.bf16.xpose.msra.mxu1 %v2631_v7  ;;  %vm2195_vm4 = vcmp.gt.f32.partialorder %v2118_v39, 0.0 }
 0x31a   :  { %vm2196_vm5 = vcmp.gt.f32.partialorder %v2120_v58, 0.0  ;;  %v2246_v47 = vmul.f32 0.1, %v2120_v58  ;;  %v2294_v36 = vsel %vm2194_vm3, %v2116_v15, %v2244_v59 }
 0x31b   :  { %vm2197_vm6 = vcmp.gt.f32.partialorder %v2122_v54, 0.0  ;;  %v2247_v28 = vmul.f32 0.1, %v2122_v54  ;;  %v2295_v38 = vsel %vm2195_vm4, %v2118_v39, %v2245_v26 }
 0x31c   :  { %v2296_v25 = vsel %vm2196_vm5, %v2120_v58, %v2246_v47 }
 0x31d   :  { %v2635_v42 = vpack.c.bf16 %v2296_v25, %v2294_v36  ;;  %v2125_v4 = vpop.f32.mrb[88].mxu1  ;;  %v2297_v8 = vsel %vm2197_vm6, %v2122_v54, %v2247_v28 }
 0x31e   :  { %v2126_v62 = vadd.f32 %v2125_v4, %v3672_v1  ;;  %v2127_v60 = vpop.f32.mrb[89].mxu1  ;;  %v2633_v12 = vpack.c.bf16 %v2297_v8, %v2295_v38 }
 0x31f   :  { %v2128_v45 = vadd.f32 %v2127_v60, %v3675_v43  ;;  %v2129_v53 = vpop.f32.mrb[90].mxu1 }
 0x320   :  { %v2248_v40 = vmul.f32 0.1, %v2126_v62  ;;  %v2130_v19 = vadd.f32 %v2129_v53, %v3672_v1  ;;  %v2131_v0 = vpop.f32.mrb[91].mxu1  ;;  %2634 = vmatprep.subr.bf16.mxu1 %v2633_v12  ;;  %vm2198_vm7 = vcmp.gt.f32.partialorder %v2126_v62, 0.0  ;;  %v2327_v53 = vrot.slane %v3664_v30, %v3774_v61 }
 0x321   :  { %v2249_v13 = vmul.f32 0.1, %v2128_v45  ;;  %v2132_v49 = vadd.f32 %v2131_v0, %v3675_v43  ;;  %2636 = vmatpush1.bf16.xpose.msra.mxu1 %v2635_v42  ;;  %vm2199_vm8 = vcmp.gt.f32.partialorder %v2128_v45, 0.0  ;;  %v3201_v30 = vmov 1966171168  }
 0x322   :  { %vm2200_vm9 = vcmp.gt.f32.partialorder %v2130_v19, 0.0  ;;  %v2250_v21 = vmul.f32 0.1, %v2130_v19  ;;  %v2298_v51 = vsel %vm2198_vm7, %v2126_v62, %v2248_v40  ;;  %v2317_v40 = vpop.permute.xlu0 %2316 }
 0x323   :  { %vm2201_vm10 = vcmp.gt.f32.partialorder %v2132_v49, 0.0  ;;  %v2251_v20 = vmul.f32 0.1, %v2132_v49  ;;  %v2299_v23 = vsel %vm2199_vm8, %v2128_v45, %v2249_v13 }
 0x324   :  { %v2300_v52 = vsel %vm2200_vm9, %v2130_v19, %v2250_v21 }
 0x325   :  { %v2639_v14 = vpack.c.bf16 %v2300_v52, %v2298_v51  ;;  %v2135_v56 = vpop.f32.mrb[92].mxu1  ;;  %v2301_v10 = vsel %vm2201_vm10, %v2132_v49, %v2251_v20 }
 0x326   :  { %v2136_v41 = vadd.f32 %v2135_v56, %v3672_v1  ;;  %v2137_v22 = vpop.f32.mrb[93].mxu1  ;;  %v2637_v9 = vpack.c.bf16 %v2301_v10, %v2299_v23  ;;  %v2421_v56 = vunpack.c.l.s4 %v3201_v30 }
 0x327   :  { %v2138_v31 = vadd.f32 %v2137_v22, %v3675_v43  ;;  %v2139_v50 = vpop.f32.mrb[94].mxu1 }
 0x328   :  { %v2252_v63 = vmul.f32 0.1, %v2136_v41  ;;  %v2140_v34 = vadd.f32 %v2139_v50, %v3672_v1  ;;  %v2141_v3 = vpop.f32.mrb[95].mxu1  ;;  %2638 = vmatprep.subr.bf16.mxu1 %v2637_v9  ;;  %vm2202_vm11 = vcmp.gt.f32.partialorder %v2136_v41, 0.0  ;;  %v2422_v23 = vunpack.c.0.s8 %v2421_v56 }
 0x329   :  { %v2253_v37 = vmul.f32 0.1, %v2138_v31  ;;  %v2142_v17 = vadd.f32 %v2141_v3, %v3675_v43  ;;  %2640 = vmatpush1.bf16.xpose.msra.mxu1 %v2639_v14  ;;  %vm2203_vm12 = vcmp.gt.f32.partialorder %v2138_v31, 0.0  ;;  %v3776_v50 = vlaneseq }
 0x32a   :  { %vm2204_vm13 = vcmp.gt.f32.partialorder %v2140_v34, 0.0  ;;  %v2254_v6 = vmul.f32 0.1, %v2140_v34  ;;  %v2302_v24 = vsel %vm2202_vm11, %v2136_v41, %v2252_v63  ;;  %v3775_v41 = vld [vmem:[#allocation13_spill] sm:$0xff] }
 0x32b   :  { %vm2205_vm14 = vcmp.gt.f32.partialorder %v2142_v17, 0.0  ;;  %v2255_v44 = vmul.f32 0.1, %v2142_v17  ;;  %v2303_v29 = vsel %vm2203_vm12, %v2138_v31, %v2253_v37  ;;  %vm2437_vm5 = vcmp.lt.s32.totalorder %v3776_v50, 200 }
 0x32c   :  { %v2304_v55 = vsel %vm2204_vm13, %v2140_v34, %v2254_v6 }
 0x32d   :  { %v2643_v27 = vpack.c.bf16 %v2304_v55, %v2302_v24  ;;  %v2145_v5 = vpop.f32.mrb[96].mxu1  ;;  %v2305_v18 = vsel %vm2205_vm14, %v2142_v17, %v2255_v44 }
 0x32e   :  { %v2146_v33 = vadd.f32 %v2145_v5, %v3672_v1  ;;  %v2147_v57 = vpop.f32.mrb[97].mxu1  ;;  %v2641_v7 = vpack.c.bf16 %v2305_v18, %v2303_v29 }
 0x32f   :  { %v2148_v48 = vadd.f32 %v2147_v57, %v3675_v43  ;;  %v2149_v11 = vpop.f32.mrb[98].mxu1 }
 0x330   :  { %v2256_v2 = vmul.f32 0.1, %v2146_v33  ;;  %v2150_v15 = vadd.f32 %v2149_v11, %v3672_v1  ;;  %v2151_v35 = vpop.f32.mrb[99].mxu1  ;;  %2642 = vmatprep.subr.bf16.mxu1 %v2641_v7  ;;  %vm2206_vm15 = vcmp.gt.f32.partialorder %v2146_v33, 0.0 }
 0x331   :  { %v2257_v32 = vmul.f32 0.1, %v2148_v48  ;;  %v2152_v39 = vadd.f32 %v2151_v35, %v3675_v43  ;;  %2644 = vmatpush1.bf16.xpose.msra.mxu1 %v2643_v27  ;;  %vm2207_vm0 = vcmp.gt.f32.partialorder %v2148_v48, 0.0 }
 0x332   :  { %vm2208_vm1 = vcmp.gt.f32.partialorder %v2150_v15, 0.0  ;;  %v2258_v46 = vmul.f32 0.1, %v2150_v15  ;;  %v2306_v58 = vsel %vm2206_vm15, %v2146_v33, %v2256_v2 }
 0x333   :  { %vm2209_vm2 = vcmp.gt.f32.partialorder %v2152_v39, 0.0  ;;  %v2259_v59 = vmul.f32 0.1, %v2152_v39  ;;  %v2307_v47 = vsel %vm2207_vm0, %v2148_v48, %v2257_v32 }
 0x334   :  { %v2308_v16 = vsel %vm2208_vm1, %v2150_v15, %v2258_v46 }
 0x335   :  { %v2647_v26 = vpack.c.bf16 %v2308_v16, %v2306_v58  ;;  %v2155_v54 = vpop.f32.mrb[100].mxu1  ;;  %v2309_v28 = vsel %vm2209_vm2, %v2152_v39, %v2259_v59 }
 0x336   :  { %v2157_v36 = vpop.f32.mrb[101].mxu1  ;;  %v2645_v25 = vpack.c.bf16 %v2309_v28, %v2307_v47  ;;  %v2156_v38 = vadd.f32 %v2155_v54, %v3672_v1 }
 0x337   :  { %v2158_v42 = vadd.f32 %v2157_v36, %v3675_v43  ;;  %v2159_v4 = vpop.f32.mrb[102].mxu1  ;;  %v2322_v43 = vrot.slane %v2317_v40, %v3774_v61  ;;  %v2425_v61 = vsub.s32 %v2422_v23, %v3775_v41 }
 0x338   :  { %v2160_v8 = vpop.f32.mrb[103].mxu1  ;;  %2646 = vmatprep.subr.bf16.mxu1 %v2645_v25  ;;  %v2260_v12 = vmul.f32 0.1, %v2156_v38  ;;  %vm2210_vm4 = vcmp.gt.f32.partialorder %v2156_v38, 0.0 }
 0x339   :  { %v2261_v62 = vmul.f32 0.1, %v2158_v42  ;;  %2648 = vmatpush1.bf16.xpose.msra.mxu1 %v2647_v26  ;;  %vm2211_vm3 = vcmp.gt.f32.partialorder %v2158_v42, 0.0 }
 0x33a   :  { %v2310_v45 = vsel %vm2210_vm4, %v2156_v38, %v2260_v12 }
 0x33b   :  { %v2311_v60 = vsel %vm2211_vm3, %v2158_v42, %v2261_v62 }
 0x33c   :  { %2382 = vmatprep.subr.mxu1 %v2311_v60 }
 0x341   :  { %2383 = vmatpush1.xpose.msra.mxu1 %v2310_v45 }
 0x344   :  { %2399 = vmatmul.mubr.f32.vlgmr.msra.gmra.mrb[104].mxu1 %v2327_v53 }
 0x417   :  { %v2400_v19 = vpop.f32.mrb[104].mxu1 }
 0x418   :  { %v2401_v1 = vadd.f32 %v2400_v19, %v2322_v43  ;;  %v2402_v0 = vpop.f32.mrb[105].mxu1 }
 0x419   :  { %v2403_v13 = vadd.f32 %v2402_v0, %v2322_v43 }
 0x41a   :  { %v2599_v49 = vmul.f32 -1.442695, %v2401_v1 }
 0x41b   :  { %v2600_v21 = vmul.f32 -1.442695, %v2403_v13 }
 0x41c   :  { %3091 = vpow2.f32 %v2599_v49 }
 0x41d   :  { %3093 = vpow2.f32 %v2600_v21 }
 0x426   :  { %v3092_v20 = vpop.eup %3091 }
 0x427   :  { %v3094_v51 = vpop.eup %3093  ;;  %v2411_v52 = vadd.f32 1.0, %v3092_v20 }
 0x428   :  { %v2412_v14 = vadd.f32 1.0, %v3094_v51 }
 0x429   :  { %3095 = vrcp.f32 %v2411_v52 }
 0x42a   :  { %3097 = vrcp.f32 %v2412_v14 }
 0x433   :  { %v3096_v10 = vpop.eup %3095 }
 0x434   :  { %v3098_v22 = vpop.eup %3097 }
 0x435   :  { %v2419_v9 = vcombine.low %v3096_v10, %v3098_v22 }
 0x437   :  { %v2426_v31 = vrot.slane %v2419_v9, %v2425_v61 }
 0x439   :  { %v2433_v63 = vrot.slane %v2426_v31, %v2425_v61 }
 0x43b   :  { %2439 = vst.msk [vmem:[#allocation9] sm:$0x3] %vm2437_vm5, %v2433_v63 }
 0x43c   :  { %3176 = shalt.err (!%p3173_p0)
}
 0x43d   :  { %s3177_s23 = scalar_lea.hbm %s3751_s7, 32 }
 0x43e   :  { %p3178_p1 = scmp.ne.s32.totalorder %s3751_s7, %s3177_s23  ;;  %p3181_p2 = scmp.lt.u32.totalorder %s3177_s23, %s3751_s7 }
 0x440   :  { %p3183_p3 = pnand %p3181_p2, %p3178_p1 }
 0x442   :  { %3186 = shalt.err (!%p3183_p3)
}
 0x443   :  { %2449 = dma.vmem_to_hbm [thread:$0]  %s2447_s5, 32, %s3751_s7, [#allocation5]  }
 0x444   :  { %3191 = dma.done.wait [#allocation5], 32  }
 0x445   :  { %3192 = vsyncadd [#allocation5], 4294967264 }
 0x446   :  { %2453 = vsyncpa [#allocation4], 1 }
 0x447   :  { %2454 = vsyncpa [#allocation7], 1 }
 0x448   :  { %2455 = vsyncpa [#allocation5], 1 }

</bundles_post_ra>
